<compile_context>
chip_gen: v6e
topology: v6e:2x2x1
jax: 0.10.0
libtpu: 0.0.40
codegen_flags: <defaults>
</compile_context>

<pallas_src>
import functools

import jax
import jax.numpy as jnp
from jax import lax
from jax.experimental import pallas as pl
from jax.experimental.pallas import tpu as pltpu


# ---------------------------------------------------------------------------
# Fused encoder kernel (one grid step == one batch element)
# ---------------------------------------------------------------------------

def _layernorm(x, g, b, eps):
    # torch.nn.LayerNorm: biased variance, eps inside the sqrt.
    mean = jnp.mean(x, axis=-1, keepdims=True)
    c = x - mean
    var = jnp.mean(c * c, axis=-1, keepdims=True)
    return c * lax.rsqrt(var + eps) * g + b


def _encoder_kernel(x_ref,
                    w1_w_ref, w1_b_ref,
                    qkv_w_ref, qkv_b_ref,
                    fc_w_ref, fc_b_ref,
                    ln1_g_ref, ln1_b_ref,
                    ffn_w_ref, ffn_b_ref,
                    ln2_g_ref, ln2_b_ref,
                    norm_g_ref, norm_b_ref,
                    o_ref,
                    *, num_stacks, n_head, d_hidden, inv_temperature, eps):
    x = x_ref[0]                                                     # (L, Din)

    # Input projection: Conv1d(input_dimension, d_model, 1) == per-pos linear.
    h = jnp.dot(x, w1_w_ref[...], preferred_element_type=jnp.float32) + w1_b_ref[...]

    L = h.shape[0]
    d_model = h.shape[-1]
    contract_last = (((1,), (1,)), ((), ()))        # q·k contraction, no k.T
    off_k = n_head * d_hidden
    off_v = 2 * n_head * d_hidden

    for s in range(num_stacks):                     # unrolled at trace time
        # ----------------- Multi-head self-attention ----------------------
        residual = h
        # Fused QKV projection: one lane-dense (L, 3*H*Dh) matmul.
        qkv = (jnp.dot(h, qkv_w_ref[s], preferred_element_type=jnp.float32)
               + qkv_b_ref[s])

        acc = jnp.zeros((L, d_model), jnp.float32)  # output-proj accumulator
        for hd in range(n_head):
            lo = hd * d_hidden
            q = qkv[:, lo:lo + d_hidden] * inv_temperature
            k = qkv[:, off_k + lo:off_k + lo + d_hidden]
            v = qkv[:, off_v + lo:off_v + lo + d_hidden]

            scores = lax.dot_general(q, k, contract_last,
                                     preferred_element_type=jnp.float32)  # (L, L)
            m = jnp.max(scores, axis=-1, keepdims=True)
            p = jnp.exp(scores - m)
            denom = jnp.sum(p, axis=-1, keepdims=True)
            r = pl.reciprocal(denom, approx=True)
            r = r * (2.0 - denom * r)               # one Newton step -> near-exact
            p = p * r                               # softmax over keys (dim=2)
            # attention dropout: identity (eval mode)
            o_h = jnp.dot(p, v, preferred_element_type=jnp.float32)     # (L, Dh)

            # Fold this head's slice of the output projection (no concat).
            acc = acc + jnp.dot(o_h, fc_w_ref[s, lo:lo + d_hidden, :],
                                preferred_element_type=jnp.float32)

        o = acc + fc_b_ref[s]
        # dropout: identity (eval mode)
        h = _layernorm(o + residual, ln1_g_ref[s], ln1_b_ref[s], eps)

        # ----------------- Position-wise FFN -------------------------------
        residual = h
        o = (jnp.dot(h, ffn_w_ref[s], preferred_element_type=jnp.float32)
             + ffn_b_ref[s])
        o = jnp.maximum(o, 0.0)                     # ReLU(Conv1d(d_model,d_model,1))
        # dropout: identity (eval mode)
        h = _layernorm(o + residual, ln2_g_ref[s], ln2_b_ref[s], eps)

    # ----------------- Final LayerNorm (residual-free path) ---------------
    h = _layernorm(h, norm_g_ref[...], norm_b_ref[...], eps)
    o_ref[0] = h.astype(o_ref.dtype)


# ---------------------------------------------------------------------------
# pallas_call wrapper
# ---------------------------------------------------------------------------

def transformer_encoder(x, params, config):
    """x: (B, L, input_dimension) -> (B, L, d_model)."""
    x = x.astype(jnp.float32)
    B, L, Din = x.shape
    S = config["num_stacks"]
    H = config["num_heads"]
    Dh = config["d_model_attn"]
    D = config["d_model"]

    temperature = float(Dh) ** 0.2                  # np.power(d_hidden, 0.2)
    kernel = functools.partial(
        _encoder_kernel,
        num_stacks=S, n_head=H, d_hidden=Dh,
        inv_temperature=1.0 / temperature, eps=1e-5)

    def wspec(shape):                               # whole-array (replicated) spec
        zeros = (0,) * len(shape)
        return pl.BlockSpec(shape, lambda b, _z=zeros: _z)

    in_specs = [
        pl.BlockSpec((1, L, Din), lambda b: (b, 0, 0)),         # x
        wspec(params["w1_w"].shape), wspec(params["w1_b"].shape),
        wspec(params["qkv_w"].shape), wspec(params["qkv_b"].shape),
        wspec(params["fc_w"].shape), wspec(params["fc_b"].shape),
        wspec(params["ln1_g"].shape), wspec(params["ln1_b"].shape),
        wspec(params["ffn_w"].shape), wspec(params["ffn_b"].shape),
        wspec(params["ln2_g"].shape), wspec(params["ln2_b"].shape),
        wspec(params["norm_g"].shape), wspec(params["norm_b"].shape),
    ]

    return pl.pallas_call(
        kernel,
        out_shape=jax.ShapeDtypeStruct((B, L, D), jnp.float32),
        grid=(B,),
        in_specs=in_specs,
        out_specs=pl.BlockSpec((1, L, D), lambda b: (b, 0, 0)),
        compiler_params=pltpu.CompilerParams(
            dimension_semantics=("parallel",)),     # shard batch over TCs on v7x
    )(x,
      params["w1_w"], params["w1_b"],
      params["qkv_w"], params["qkv_b"],
      params["fc_w"], params["fc_b"],
      params["ln1_g"], params["ln1_b"],
      params["ffn_w"], params["ffn_b"],
      params["ln2_g"], params["ln2_b"],
      params["norm_g"], params["norm_b"])


# ---------------------------------------------------------------------------
# Deterministic parameter initialization (shapes follow the torch __init__).
# The torch module deepcopies ONE EncoderLayer for every stack, so all stacks
# start with identical weights; we replicate them along a leading stack axis.
# ---------------------------------------------------------------------------

def init_params(key, config):
    D = config["d_model"]
    Dh = config["d_model_attn"]
    H = config["num_heads"]
    Din = config["input_dimension"]
    S = config["num_stacks"]
    ks = jax.random.split(key, 6)

    std_qkv = (2.0 / (D + Dh)) ** 0.5
    wq = std_qkv * jax.random.normal(ks[0], (D, H * Dh), jnp.float32)
    wk = std_qkv * jax.random.normal(ks[1], (D, H * Dh), jnp.float32)
    wv = std_qkv * jax.random.normal(ks[2], (D, H * Dh), jnp.float32)
    qkv_w = jnp.concatenate([wq, wk, wv], axis=1)            # (D, 3*H*Dh) fused
    fc_w = ((2.0 / (H * Dh + D)) ** 0.5
            * jax.random.normal(ks[3], (H * Dh, D), jnp.float32))
    ffn_w = 0.1 * jax.random.normal(ks[4], (D, D), jnp.float32)

    def stack(a):                                            # deepcopy semantics
        return jnp.stack([a] * S, axis=0)

    return dict(
        w1_w=0.1 * jax.random.normal(ks[5], (Din, D), jnp.float32),
        w1_b=jnp.zeros((1, D), jnp.float32),
        qkv_w=stack(qkv_w),
        qkv_b=stack(jnp.zeros((1, 3 * H * Dh), jnp.float32)),
        fc_w=stack(fc_w),
        fc_b=stack(jnp.zeros((1, D), jnp.float32)),
        ln1_g=stack(jnp.ones((1, D), jnp.float32)),
        ln1_b=stack(jnp.zeros((1, D), jnp.float32)),
        ffn_w=stack(ffn_w),
        ffn_b=stack(jnp.zeros((1, D), jnp.float32)),
        ln2_g=stack(jnp.ones((1, D), jnp.float32)),
        ln2_b=stack(jnp.zeros((1, D), jnp.float32)),
        norm_g=jnp.ones((1, D), jnp.float32),
        norm_b=jnp.zeros((1, D), jnp.float32),
    )


# ---------------------------------------------------------------------------
if __name__ == "__main__":
    config = dict(
        d_model=32,
        d_model_attn=16,   # d_hidden per head
        num_heads=4,
        num_stacks=2,
        input_dimension=4,
    )
    B, L = 2, 8

    key = jax.random.PRNGKey(0)
    k_x, k_p = jax.random.split(key)
    x = jax.random.normal(k_x, (B, L, config["input_dimension"]), jnp.float32)
    params = init_params(k_p, config)

    out = transformer_encoder(x, params, config)
    out = jax.block_until_ready(out)
    assert out.shape == (B, L, config["d_model"])
    assert out.dtype == jnp.float32
    print("KERNEL_OK")
</pallas_src>

<mosaic_0001>
module attributes {stable_mosaic.version = 11 : i64} {
  func.func @_encoder_kernel(%arg0: i32, %arg1: memref<1x8x4xf32, #tpu.memory_space<vmem>>, %arg2: memref<4x32xf32, #tpu.memory_space<vmem>>, %arg3: memref<1x32xf32, #tpu.memory_space<vmem>>, %arg4: memref<2x32x192xf32, #tpu.memory_space<vmem>>, %arg5: memref<2x1x192xf32, #tpu.memory_space<vmem>>, %arg6: memref<2x64x32xf32, #tpu.memory_space<vmem>>, %arg7: memref<2x1x32xf32, #tpu.memory_space<vmem>>, %arg8: memref<2x1x32xf32, #tpu.memory_space<vmem>>, %arg9: memref<2x1x32xf32, #tpu.memory_space<vmem>>, %arg10: memref<2x32x32xf32, #tpu.memory_space<vmem>>, %arg11: memref<2x1x32xf32, #tpu.memory_space<vmem>>, %arg12: memref<2x1x32xf32, #tpu.memory_space<vmem>>, %arg13: memref<2x1x32xf32, #tpu.memory_space<vmem>>, %arg14: memref<1x32xf32, #tpu.memory_space<vmem>>, %arg15: memref<1x32xf32, #tpu.memory_space<vmem>>, %arg16: memref<1x8x32xf32, #tpu.memory_space<vmem>>) attributes {dimension_semantics = [#tpu.dimension_semantics<parallel>], iteration_bounds = array<i64: 2>, scalar_prefetch = 0 : i64, scratch_operands = 0 : i64, tpu.core_type = #tpu.core_type<tc>, window_params = [{transform_indices = @transform_0, window_bounds = array<i64: 1, 8, 4>}, {pipeline_mode = #tpu.pipeline_mode<synchronous>, transform_indices = @transform_1, window_bounds = array<i64: 4, 32>}, {pipeline_mode = #tpu.pipeline_mode<synchronous>, transform_indices = @transform_2, window_bounds = array<i64: 1, 32>}, {pipeline_mode = #tpu.pipeline_mode<synchronous>, transform_indices = @transform_3, window_bounds = array<i64: 2, 32, 192>}, {pipeline_mode = #tpu.pipeline_mode<synchronous>, transform_indices = @transform_4, window_bounds = array<i64: 2, 1, 192>}, {pipeline_mode = #tpu.pipeline_mode<synchronous>, transform_indices = @transform_5, window_bounds = array<i64: 2, 64, 32>}, {pipeline_mode = #tpu.pipeline_mode<synchronous>, transform_indices = @transform_6, window_bounds = array<i64: 2, 1, 32>}, {pipeline_mode = #tpu.pipeline_mode<synchronous>, transform_indices = @transform_7, window_bounds = array<i64: 2, 1, 32>}, {pipeline_mode = #tpu.pipeline_mode<synchronous>, transform_indices = @transform_8, window_bounds = array<i64: 2, 1, 32>}, {pipeline_mode = #tpu.pipeline_mode<synchronous>, transform_indices = @transform_9, window_bounds = array<i64: 2, 32, 32>}, {pipeline_mode = #tpu.pipeline_mode<synchronous>, transform_indices = @transform_10, window_bounds = array<i64: 2, 1, 32>}, {pipeline_mode = #tpu.pipeline_mode<synchronous>, transform_indices = @transform_11, window_bounds = array<i64: 2, 1, 32>}, {pipeline_mode = #tpu.pipeline_mode<synchronous>, transform_indices = @transform_12, window_bounds = array<i64: 2, 1, 32>}, {pipeline_mode = #tpu.pipeline_mode<synchronous>, transform_indices = @transform_13, window_bounds = array<i64: 1, 32>}, {pipeline_mode = #tpu.pipeline_mode<synchronous>, transform_indices = @transform_14, window_bounds = array<i64: 1, 32>}, {transform_indices = @transform_15, window_bounds = array<i64: 1, 8, 32>}]} {
    %c0 = arith.constant 0 : index
    %c0_0 = arith.constant 0 : index
    %c0_1 = arith.constant 0 : index
    %0 = vector.load %arg1[%c0, %c0_0, %c0_1] : memref<1x8x4xf32, #tpu.memory_space<vmem>>, vector<1x8x4xf32>
    %1 = vector.shape_cast %0 : vector<1x8x4xf32> to vector<8x4xf32>
    %c0_2 = arith.constant 0 : index
    %c0_3 = arith.constant 0 : index
    %2 = vector.load %arg2[%c0_2, %c0_3] : memref<4x32xf32, #tpu.memory_space<vmem>>, vector<4x32xf32>
    %cst = arith.constant dense<0.000000e+00> : vector<8x32xf32>
    %3 = tpu.matmul %1, %2, %cst {dimension_numbers = #tpu.dot_dimension_numbers<[1], [0], [0], [1], [0, 0, 1, 1], [], []>} : vector<8x4xf32>, vector<4x32xf32>, vector<8x32xf32> -> vector<8x32xf32>
    %c0_4 = arith.constant 0 : index
    %c0_5 = arith.constant 0 : index
    %4 = vector.load %arg3[%c0_4, %c0_5] : memref<1x32xf32, #tpu.memory_space<vmem>>, vector<1x32xf32>
    %5 = vector.broadcast %4 : vector<1x32xf32> to vector<8x32xf32>
    %6 = arith.addf %3, %5 : vector<8x32xf32>
    %c0_6 = arith.constant 0 : index
    %c0_7 = arith.constant 0 : index
    %c0_8 = arith.constant 0 : index
    %7 = vector.load %arg4[%c0_6, %c0_7, %c0_8] : memref<2x32x192xf32, #tpu.memory_space<vmem>>, vector<1x32x192xf32>
    %8 = vector.shape_cast %7 : vector<1x32x192xf32> to vector<32x192xf32>
    %cst_9 = arith.constant dense<0.000000e+00> : vector<8x192xf32>
    %9 = tpu.matmul %6, %8, %cst_9 {dimension_numbers = #tpu.dot_dimension_numbers<[1], [0], [0], [1], [0, 0, 1, 1], [], []>} : vector<8x32xf32>, vector<32x192xf32>, vector<8x192xf32> -> vector<8x192xf32>
    %c0_10 = arith.constant 0 : index
    %c0_11 = arith.constant 0 : index
    %c0_12 = arith.constant 0 : index
    %10 = vector.load %arg5[%c0_10, %c0_11, %c0_12] : memref<2x1x192xf32, #tpu.memory_space<vmem>>, vector<1x1x192xf32>
    %11 = vector.shape_cast %10 : vector<1x1x192xf32> to vector<1x192xf32>
    %12 = vector.broadcast %11 : vector<1x192xf32> to vector<8x192xf32>
    %13 = arith.addf %9, %12 : vector<8x192xf32>
    %cst_13 = arith.constant 0.000000e+00 : f32
    %14 = vector.broadcast %cst_13 : f32 to vector<8x32xf32>
    %15 = vector.extract_strided_slice %13 {offsets = [0, 0], sizes = [8, 16], strides = [1, 1]} : vector<8x192xf32> to vector<8x16xf32>
    %cst_14 = arith.constant 0.574349165 : f32
    %16 = vector.broadcast %cst_14 : f32 to vector<8x16xf32>
    %17 = arith.mulf %15, %16 : vector<8x16xf32>
    %18 = vector.extract_strided_slice %13 {offsets = [0, 64], sizes = [8, 16], strides = [1, 1]} : vector<8x192xf32> to vector<8x16xf32>
    %19 = vector.extract_strided_slice %13 {offsets = [0, 128], sizes = [8, 16], strides = [1, 1]} : vector<8x192xf32> to vector<8x16xf32>
    %cst_15 = arith.constant dense<0.000000e+00> : vector<8x8xf32>
    %20 = tpu.matmul %17, %18, %cst_15 {dimension_numbers = #tpu.dot_dimension_numbers<[1], [1], [0], [0], [0, 0, 1, 0], [], []>} : vector<8x16xf32>, vector<8x16xf32>, vector<8x8xf32> -> vector<8x8xf32>
    %cst_16 = arith.constant dense<0xFF800000> : vector<8xf32>
    %21 = vector.multi_reduction <maximumf>, %20, %cst_16 [1] : vector<8x8xf32> to vector<8xf32>
    %22 = vector.shape_cast %21 : vector<8xf32> to vector<8x1xf32>
    %23 = vector.broadcast %22 : vector<8x1xf32> to vector<8x8xf32>
    %24 = arith.subf %20, %23 : vector<8x8xf32>
    %25 = math.exp %24 : vector<8x8xf32>
    %cst_17 = arith.constant dense<0.000000e+00> : vector<8xf32>
    %26 = vector.multi_reduction <add>, %25, %cst_17 [1] : vector<8x8xf32> to vector<8xf32>
    %27 = vector.shape_cast %26 : vector<8xf32> to vector<8x1xf32>
    %28 = tpu.reciprocal %27 {approx = true} : vector<8x1xf32> -> vector<8x1xf32>
    %29 = arith.mulf %27, %28 : vector<8x1xf32>
    %cst_18 = arith.constant 2.000000e+00 : f32
    %30 = vector.broadcast %cst_18 : f32 to vector<8x1xf32>
    %31 = arith.subf %30, %29 : vector<8x1xf32>
    %32 = arith.mulf %28, %31 : vector<8x1xf32>
    %33 = vector.broadcast %32 : vector<8x1xf32> to vector<8x8xf32>
    %34 = arith.mulf %25, %33 : vector<8x8xf32>
    %cst_19 = arith.constant dense<0.000000e+00> : vector<8x16xf32>
    %35 = tpu.matmul %34, %19, %cst_19 {dimension_numbers = #tpu.dot_dimension_numbers<[1], [0], [0], [1], [0, 0, 1, 1], [], []>} : vector<8x8xf32>, vector<8x16xf32>, vector<8x16xf32> -> vector<8x16xf32>
    %c0_20 = arith.constant 0 : index
    %c0_21 = arith.constant 0 : index
    %c0_22 = arith.constant 0 : index
    %36 = vector.load %arg6[%c0_20, %c0_21, %c0_22] : memref<2x64x32xf32, #tpu.memory_space<vmem>>, vector<1x16x32xf32>
    %37 = vector.shape_cast %36 : vector<1x16x32xf32> to vector<16x32xf32>
    %cst_23 = arith.constant dense<0.000000e+00> : vector<8x32xf32>
    %38 = tpu.matmul %35, %37, %cst_23 {dimension_numbers = #tpu.dot_dimension_numbers<[1], [0], [0], [1], [0, 0, 1, 1], [], []>} : vector<8x16xf32>, vector<16x32xf32>, vector<8x32xf32> -> vector<8x32xf32>
    %39 = arith.addf %14, %38 : vector<8x32xf32>
    %40 = vector.extract_strided_slice %13 {offsets = [0, 16], sizes = [8, 16], strides = [1, 1]} : vector<8x192xf32> to vector<8x16xf32>
    %cst_24 = arith.constant 0.574349165 : f32
    %41 = vector.broadcast %cst_24 : f32 to vector<8x16xf32>
    %42 = arith.mulf %40, %41 : vector<8x16xf32>
    %43 = vector.extract_strided_slice %13 {offsets = [0, 80], sizes = [8, 16], strides = [1, 1]} : vector<8x192xf32> to vector<8x16xf32>
    %44 = vector.extract_strided_slice %13 {offsets = [0, 144], sizes = [8, 16], strides = [1, 1]} : vector<8x192xf32> to vector<8x16xf32>
    %cst_25 = arith.constant dense<0.000000e+00> : vector<8x8xf32>
    %45 = tpu.matmul %42, %43, %cst_25 {dimension_numbers = #tpu.dot_dimension_numbers<[1], [1], [0], [0], [0, 0, 1, 0], [], []>} : vector<8x16xf32>, vector<8x16xf32>, vector<8x8xf32> -> vector<8x8xf32>
    %cst_26 = arith.constant dense<0xFF800000> : vector<8xf32>
    %46 = vector.multi_reduction <maximumf>, %45, %cst_26 [1] : vector<8x8xf32> to vector<8xf32>
    %47 = vector.shape_cast %46 : vector<8xf32> to vector<8x1xf32>
    %48 = vector.broadcast %47 : vector<8x1xf32> to vector<8x8xf32>
    %49 = arith.subf %45, %48 : vector<8x8xf32>
    %50 = math.exp %49 : vector<8x8xf32>
    %cst_27 = arith.constant dense<0.000000e+00> : vector<8xf32>
    %51 = vector.multi_reduction <add>, %50, %cst_27 [1] : vector<8x8xf32> to vector<8xf32>
    %52 = vector.shape_cast %51 : vector<8xf32> to vector<8x1xf32>
    %53 = tpu.reciprocal %52 {approx = true} : vector<8x1xf32> -> vector<8x1xf32>
    %54 = arith.mulf %52, %53 : vector<8x1xf32>
    %cst_28 = arith.constant 2.000000e+00 : f32
    %55 = vector.broadcast %cst_28 : f32 to vector<8x1xf32>
    %56 = arith.subf %55, %54 : vector<8x1xf32>
    %57 = arith.mulf %53, %56 : vector<8x1xf32>
    %58 = vector.broadcast %57 : vector<8x1xf32> to vector<8x8xf32>
    %59 = arith.mulf %50, %58 : vector<8x8xf32>
    %cst_29 = arith.constant dense<0.000000e+00> : vector<8x16xf32>
    %60 = tpu.matmul %59, %44, %cst_29 {dimension_numbers = #tpu.dot_dimension_numbers<[1], [0], [0], [1], [0, 0, 1, 1], [], []>} : vector<8x8xf32>, vector<8x16xf32>, vector<8x16xf32> -> vector<8x16xf32>
    %c0_30 = arith.constant 0 : index
    %c16 = arith.constant 16 : index
    %c0_31 = arith.constant 0 : index
    %61 = vector.load %arg6[%c0_30, %c16, %c0_31] : memref<2x64x32xf32, #tpu.memory_space<vmem>>, vector<1x16x32xf32>
    %62 = vector.shape_cast %61 : vector<1x16x32xf32> to vector<16x32xf32>
    %cst_32 = arith.constant dense<0.000000e+00> : vector<8x32xf32>
    %63 = tpu.matmul %60, %62, %cst_32 {dimension_numbers = #tpu.dot_dimension_numbers<[1], [0], [0], [1], [0, 0, 1, 1], [], []>} : vector<8x16xf32>, vector<16x32xf32>, vector<8x32xf32> -> vector<8x32xf32>
    %64 = arith.addf %39, %63 : vector<8x32xf32>
    %65 = vector.extract_strided_slice %13 {offsets = [0, 32], sizes = [8, 16], strides = [1, 1]} : vector<8x192xf32> to vector<8x16xf32>
    %cst_33 = arith.constant 0.574349165 : f32
    %66 = vector.broadcast %cst_33 : f32 to vector<8x16xf32>
    %67 = arith.mulf %65, %66 : vector<8x16xf32>
    %68 = vector.extract_strided_slice %13 {offsets = [0, 96], sizes = [8, 16], strides = [1, 1]} : vector<8x192xf32> to vector<8x16xf32>
    %69 = vector.extract_strided_slice %13 {offsets = [0, 160], sizes = [8, 16], strides = [1, 1]} : vector<8x192xf32> to vector<8x16xf32>
    %cst_34 = arith.constant dense<0.000000e+00> : vector<8x8xf32>
    %70 = tpu.matmul %67, %68, %cst_34 {dimension_numbers = #tpu.dot_dimension_numbers<[1], [1], [0], [0], [0, 0, 1, 0], [], []>} : vector<8x16xf32>, vector<8x16xf32>, vector<8x8xf32> -> vector<8x8xf32>
    %cst_35 = arith.constant dense<0xFF800000> : vector<8xf32>
    %71 = vector.multi_reduction <maximumf>, %70, %cst_35 [1] : vector<8x8xf32> to vector<8xf32>
    %72 = vector.shape_cast %71 : vector<8xf32> to vector<8x1xf32>
    %73 = vector.broadcast %72 : vector<8x1xf32> to vector<8x8xf32>
    %74 = arith.subf %70, %73 : vector<8x8xf32>
    %75 = math.exp %74 : vector<8x8xf32>
    %cst_36 = arith.constant dense<0.000000e+00> : vector<8xf32>
    %76 = vector.multi_reduction <add>, %75, %cst_36 [1] : vector<8x8xf32> to vector<8xf32>
    %77 = vector.shape_cast %76 : vector<8xf32> to vector<8x1xf32>
    %78 = tpu.reciprocal %77 {approx = true} : vector<8x1xf32> -> vector<8x1xf32>
    %79 = arith.mulf %77, %78 : vector<8x1xf32>
    %cst_37 = arith.constant 2.000000e+00 : f32
    %80 = vector.broadcast %cst_37 : f32 to vector<8x1xf32>
    %81 = arith.subf %80, %79 : vector<8x1xf32>
    %82 = arith.mulf %78, %81 : vector<8x1xf32>
    %83 = vector.broadcast %82 : vector<8x1xf32> to vector<8x8xf32>
    %84 = arith.mulf %75, %83 : vector<8x8xf32>
    %cst_38 = arith.constant dense<0.000000e+00> : vector<8x16xf32>
    %85 = tpu.matmul %84, %69, %cst_38 {dimension_numbers = #tpu.dot_dimension_numbers<[1], [0], [0], [1], [0, 0, 1, 1], [], []>} : vector<8x8xf32>, vector<8x16xf32>, vector<8x16xf32> -> vector<8x16xf32>
    %c0_39 = arith.constant 0 : index
    %c32 = arith.constant 32 : index
    %c0_40 = arith.constant 0 : index
    %86 = vector.load %arg6[%c0_39, %c32, %c0_40] : memref<2x64x32xf32, #tpu.memory_space<vmem>>, vector<1x16x32xf32>
    %87 = vector.shape_cast %86 : vector<1x16x32xf32> to vector<16x32xf32>
    %cst_41 = arith.constant dense<0.000000e+00> : vector<8x32xf32>
    %88 = tpu.matmul %85, %87, %cst_41 {dimension_numbers = #tpu.dot_dimension_numbers<[1], [0], [0], [1], [0, 0, 1, 1], [], []>} : vector<8x16xf32>, vector<16x32xf32>, vector<8x32xf32> -> vector<8x32xf32>
    %89 = arith.addf %64, %88 : vector<8x32xf32>
    %90 = vector.extract_strided_slice %13 {offsets = [0, 48], sizes = [8, 16], strides = [1, 1]} : vector<8x192xf32> to vector<8x16xf32>
    %cst_42 = arith.constant 0.574349165 : f32
    %91 = vector.broadcast %cst_42 : f32 to vector<8x16xf32>
    %92 = arith.mulf %90, %91 : vector<8x16xf32>
    %93 = vector.extract_strided_slice %13 {offsets = [0, 112], sizes = [8, 16], strides = [1, 1]} : vector<8x192xf32> to vector<8x16xf32>
    %94 = vector.extract_strided_slice %13 {offsets = [0, 176], sizes = [8, 16], strides = [1, 1]} : vector<8x192xf32> to vector<8x16xf32>
    %cst_43 = arith.constant dense<0.000000e+00> : vector<8x8xf32>
    %95 = tpu.matmul %92, %93, %cst_43 {dimension_numbers = #tpu.dot_dimension_numbers<[1], [1], [0], [0], [0, 0, 1, 0], [], []>} : vector<8x16xf32>, vector<8x16xf32>, vector<8x8xf32> -> vector<8x8xf32>
    %cst_44 = arith.constant dense<0xFF800000> : vector<8xf32>
    %96 = vector.multi_reduction <maximumf>, %95, %cst_44 [1] : vector<8x8xf32> to vector<8xf32>
    %97 = vector.shape_cast %96 : vector<8xf32> to vector<8x1xf32>
    %98 = vector.broadcast %97 : vector<8x1xf32> to vector<8x8xf32>
    %99 = arith.subf %95, %98 : vector<8x8xf32>
    %100 = math.exp %99 : vector<8x8xf32>
    %cst_45 = arith.constant dense<0.000000e+00> : vector<8xf32>
    %101 = vector.multi_reduction <add>, %100, %cst_45 [1] : vector<8x8xf32> to vector<8xf32>
    %102 = vector.shape_cast %101 : vector<8xf32> to vector<8x1xf32>
    %103 = tpu.reciprocal %102 {approx = true} : vector<8x1xf32> -> vector<8x1xf32>
    %104 = arith.mulf %102, %103 : vector<8x1xf32>
    %cst_46 = arith.constant 2.000000e+00 : f32
    %105 = vector.broadcast %cst_46 : f32 to vector<8x1xf32>
    %106 = arith.subf %105, %104 : vector<8x1xf32>
    %107 = arith.mulf %103, %106 : vector<8x1xf32>
    %108 = vector.broadcast %107 : vector<8x1xf32> to vector<8x8xf32>
    %109 = arith.mulf %100, %108 : vector<8x8xf32>
    %cst_47 = arith.constant dense<0.000000e+00> : vector<8x16xf32>
    %110 = tpu.matmul %109, %94, %cst_47 {dimension_numbers = #tpu.dot_dimension_numbers<[1], [0], [0], [1], [0, 0, 1, 1], [], []>} : vector<8x8xf32>, vector<8x16xf32>, vector<8x16xf32> -> vector<8x16xf32>
    %c0_48 = arith.constant 0 : index
    %c48 = arith.constant 48 : index
    %c0_49 = arith.constant 0 : index
    %111 = vector.load %arg6[%c0_48, %c48, %c0_49] : memref<2x64x32xf32, #tpu.memory_space<vmem>>, vector<1x16x32xf32>
    %112 = vector.shape_cast %111 : vector<1x16x32xf32> to vector<16x32xf32>
    %cst_50 = arith.constant dense<0.000000e+00> : vector<8x32xf32>
    %113 = tpu.matmul %110, %112, %cst_50 {dimension_numbers = #tpu.dot_dimension_numbers<[1], [0], [0], [1], [0, 0, 1, 1], [], []>} : vector<8x16xf32>, vector<16x32xf32>, vector<8x32xf32> -> vector<8x32xf32>
    %114 = arith.addf %89, %113 : vector<8x32xf32>
    %c0_51 = arith.constant 0 : index
    %c0_52 = arith.constant 0 : index
    %c0_53 = arith.constant 0 : index
    %115 = vector.load %arg7[%c0_51, %c0_52, %c0_53] : memref<2x1x32xf32, #tpu.memory_space<vmem>>, vector<1x1x32xf32>
    %116 = vector.shape_cast %115 : vector<1x1x32xf32> to vector<1x32xf32>
    %117 = vector.broadcast %116 : vector<1x32xf32> to vector<8x32xf32>
    %118 = arith.addf %114, %117 : vector<8x32xf32>
    %119 = arith.addf %118, %6 : vector<8x32xf32>
    %c0_54 = arith.constant 0 : index
    %c0_55 = arith.constant 0 : index
    %c0_56 = arith.constant 0 : index
    %120 = vector.load %arg8[%c0_54, %c0_55, %c0_56] : memref<2x1x32xf32, #tpu.memory_space<vmem>>, vector<1x1x32xf32>
    %121 = vector.shape_cast %120 : vector<1x1x32xf32> to vector<1x32xf32>
    %c0_57 = arith.constant 0 : index
    %c0_58 = arith.constant 0 : index
    %c0_59 = arith.constant 0 : index
    %122 = vector.load %arg9[%c0_57, %c0_58, %c0_59] : memref<2x1x32xf32, #tpu.memory_space<vmem>>, vector<1x1x32xf32>
    %123 = vector.shape_cast %122 : vector<1x1x32xf32> to vector<1x32xf32>
    %cst_60 = arith.constant dense<0.000000e+00> : vector<8xf32>
    %124 = vector.multi_reduction <add>, %119, %cst_60 [1] : vector<8x32xf32> to vector<8xf32>
    %125 = vector.shape_cast %124 : vector<8xf32> to vector<8x1xf32>
    %cst_61 = arith.constant 3.200000e+01 : f32
    %126 = vector.broadcast %cst_61 : f32 to vector<8x1xf32>
    %127 = arith.divf %125, %126 : vector<8x1xf32>
    %128 = vector.broadcast %127 : vector<8x1xf32> to vector<8x32xf32>
    %129 = arith.subf %119, %128 : vector<8x32xf32>
    %130 = arith.mulf %129, %129 : vector<8x32xf32>
    %cst_62 = arith.constant dense<0.000000e+00> : vector<8xf32>
    %131 = vector.multi_reduction <add>, %130, %cst_62 [1] : vector<8x32xf32> to vector<8xf32>
    %132 = vector.shape_cast %131 : vector<8xf32> to vector<8x1xf32>
    %cst_63 = arith.constant 3.200000e+01 : f32
    %133 = vector.broadcast %cst_63 : f32 to vector<8x1xf32>
    %134 = arith.divf %132, %133 : vector<8x1xf32>
    %cst_64 = arith.constant 9.99999974E-6 : f32
    %135 = vector.broadcast %cst_64 : f32 to vector<8x1xf32>
    %136 = arith.addf %134, %135 : vector<8x1xf32>
    %137 = math.rsqrt %136 : vector<8x1xf32>
    %138 = vector.broadcast %137 : vector<8x1xf32> to vector<8x32xf32>
    %139 = arith.mulf %129, %138 : vector<8x32xf32>
    %140 = vector.broadcast %121 : vector<1x32xf32> to vector<8x32xf32>
    %141 = arith.mulf %139, %140 : vector<8x32xf32>
    %142 = vector.broadcast %123 : vector<1x32xf32> to vector<8x32xf32>
    %143 = arith.addf %141, %142 : vector<8x32xf32>
    %c0_65 = arith.constant 0 : index
    %c0_66 = arith.constant 0 : index
    %c0_67 = arith.constant 0 : index
    %144 = vector.load %arg10[%c0_65, %c0_66, %c0_67] : memref<2x32x32xf32, #tpu.memory_space<vmem>>, vector<1x32x32xf32>
    %145 = vector.shape_cast %144 : vector<1x32x32xf32> to vector<32x32xf32>
    %cst_68 = arith.constant dense<0.000000e+00> : vector<8x32xf32>
    %146 = tpu.matmul %143, %145, %cst_68 {dimension_numbers = #tpu.dot_dimension_numbers<[1], [0], [0], [1], [0, 0, 1, 1], [], []>} : vector<8x32xf32>, vector<32x32xf32>, vector<8x32xf32> -> vector<8x32xf32>
    %c0_69 = arith.constant 0 : index
    %c0_70 = arith.constant 0 : index
    %c0_71 = arith.constant 0 : index
    %147 = vector.load %arg11[%c0_69, %c0_70, %c0_71] : memref<2x1x32xf32, #tpu.memory_space<vmem>>, vector<1x1x32xf32>
    %148 = vector.shape_cast %147 : vector<1x1x32xf32> to vector<1x32xf32>
    %149 = vector.broadcast %148 : vector<1x32xf32> to vector<8x32xf32>
    %150 = arith.addf %146, %149 : vector<8x32xf32>
    %cst_72 = arith.constant 0.000000e+00 : f32
    %151 = vector.broadcast %cst_72 : f32 to vector<8x32xf32>
    %152 = arith.maximumf %150, %151 : vector<8x32xf32>
    %153 = arith.addf %152, %143 : vector<8x32xf32>
    %c0_73 = arith.constant 0 : index
    %c0_74 = arith.constant 0 : index
    %c0_75 = arith.constant 0 : index
    %154 = vector.load %arg12[%c0_73, %c0_74, %c0_75] : memref<2x1x32xf32, #tpu.memory_space<vmem>>, vector<1x1x32xf32>
    %155 = vector.shape_cast %154 : vector<1x1x32xf32> to vector<1x32xf32>
    %c0_76 = arith.constant 0 : index
    %c0_77 = arith.constant 0 : index
    %c0_78 = arith.constant 0 : index
    %156 = vector.load %arg13[%c0_76, %c0_77, %c0_78] : memref<2x1x32xf32, #tpu.memory_space<vmem>>, vector<1x1x32xf32>
    %157 = vector.shape_cast %156 : vector<1x1x32xf32> to vector<1x32xf32>
    %cst_79 = arith.constant dense<0.000000e+00> : vector<8xf32>
    %158 = vector.multi_reduction <add>, %153, %cst_79 [1] : vector<8x32xf32> to vector<8xf32>
    %159 = vector.shape_cast %158 : vector<8xf32> to vector<8x1xf32>
    %cst_80 = arith.constant 3.200000e+01 : f32
    %160 = vector.broadcast %cst_80 : f32 to vector<8x1xf32>
    %161 = arith.divf %159, %160 : vector<8x1xf32>
    %162 = vector.broadcast %161 : vector<8x1xf32> to vector<8x32xf32>
    %163 = arith.subf %153, %162 : vector<8x32xf32>
    %164 = arith.mulf %163, %163 : vector<8x32xf32>
    %cst_81 = arith.constant dense<0.000000e+00> : vector<8xf32>
    %165 = vector.multi_reduction <add>, %164, %cst_81 [1] : vector<8x32xf32> to vector<8xf32>
    %166 = vector.shape_cast %165 : vector<8xf32> to vector<8x1xf32>
    %cst_82 = arith.constant 3.200000e+01 : f32
    %167 = vector.broadcast %cst_82 : f32 to vector<8x1xf32>
    %168 = arith.divf %166, %167 : vector<8x1xf32>
    %cst_83 = arith.constant 9.99999974E-6 : f32
    %169 = vector.broadcast %cst_83 : f32 to vector<8x1xf32>
    %170 = arith.addf %168, %169 : vector<8x1xf32>
    %171 = math.rsqrt %170 : vector<8x1xf32>
    %172 = vector.broadcast %171 : vector<8x1xf32> to vector<8x32xf32>
    %173 = arith.mulf %163, %172 : vector<8x32xf32>
    %174 = vector.broadcast %155 : vector<1x32xf32> to vector<8x32xf32>
    %175 = arith.mulf %173, %174 : vector<8x32xf32>
    %176 = vector.broadcast %157 : vector<1x32xf32> to vector<8x32xf32>
    %177 = arith.addf %175, %176 : vector<8x32xf32>
    %c1 = arith.constant 1 : index
    %c0_84 = arith.constant 0 : index
    %c0_85 = arith.constant 0 : index
    %178 = vector.load %arg4[%c1, %c0_84, %c0_85] : memref<2x32x192xf32, #tpu.memory_space<vmem>>, vector<1x32x192xf32>
    %179 = vector.shape_cast %178 : vector<1x32x192xf32> to vector<32x192xf32>
    %cst_86 = arith.constant dense<0.000000e+00> : vector<8x192xf32>
    %180 = tpu.matmul %177, %179, %cst_86 {dimension_numbers = #tpu.dot_dimension_numbers<[1], [0], [0], [1], [0, 0, 1, 1], [], []>} : vector<8x32xf32>, vector<32x192xf32>, vector<8x192xf32> -> vector<8x192xf32>
    %c1_87 = arith.constant 1 : index
    %c0_88 = arith.constant 0 : index
    %c0_89 = arith.constant 0 : index
    %181 = vector.load %arg5[%c1_87, %c0_88, %c0_89] : memref<2x1x192xf32, #tpu.memory_space<vmem>>, vector<1x1x192xf32>
    %182 = vector.shape_cast %181 : vector<1x1x192xf32> to vector<1x192xf32>
    %183 = vector.broadcast %182 : vector<1x192xf32> to vector<8x192xf32>
    %184 = arith.addf %180, %183 : vector<8x192xf32>
    %cst_90 = arith.constant 0.000000e+00 : f32
    %185 = vector.broadcast %cst_90 : f32 to vector<8x32xf32>
    %186 = vector.extract_strided_slice %184 {offsets = [0, 0], sizes = [8, 16], strides = [1, 1]} : vector<8x192xf32> to vector<8x16xf32>
    %cst_91 = arith.constant 0.574349165 : f32
    %187 = vector.broadcast %cst_91 : f32 to vector<8x16xf32>
    %188 = arith.mulf %186, %187 : vector<8x16xf32>
    %189 = vector.extract_strided_slice %184 {offsets = [0, 64], sizes = [8, 16], strides = [1, 1]} : vector<8x192xf32> to vector<8x16xf32>
    %190 = vector.extract_strided_slice %184 {offsets = [0, 128], sizes = [8, 16], strides = [1, 1]} : vector<8x192xf32> to vector<8x16xf32>
    %cst_92 = arith.constant dense<0.000000e+00> : vector<8x8xf32>
    %191 = tpu.matmul %188, %189, %cst_92 {dimension_numbers = #tpu.dot_dimension_numbers<[1], [1], [0], [0], [0, 0, 1, 0], [], []>} : vector<8x16xf32>, vector<8x16xf32>, vector<8x8xf32> -> vector<8x8xf32>
    %cst_93 = arith.constant dense<0xFF800000> : vector<8xf32>
    %192 = vector.multi_reduction <maximumf>, %191, %cst_93 [1] : vector<8x8xf32> to vector<8xf32>
    %193 = vector.shape_cast %192 : vector<8xf32> to vector<8x1xf32>
    %194 = vector.broadcast %193 : vector<8x1xf32> to vector<8x8xf32>
    %195 = arith.subf %191, %194 : vector<8x8xf32>
    %196 = math.exp %195 : vector<8x8xf32>
    %cst_94 = arith.constant dense<0.000000e+00> : vector<8xf32>
    %197 = vector.multi_reduction <add>, %196, %cst_94 [1] : vector<8x8xf32> to vector<8xf32>
    %198 = vector.shape_cast %197 : vector<8xf32> to vector<8x1xf32>
    %199 = tpu.reciprocal %198 {approx = true} : vector<8x1xf32> -> vector<8x1xf32>
    %200 = arith.mulf %198, %199 : vector<8x1xf32>
    %cst_95 = arith.constant 2.000000e+00 : f32
    %201 = vector.broadcast %cst_95 : f32 to vector<8x1xf32>
    %202 = arith.subf %201, %200 : vector<8x1xf32>
    %203 = arith.mulf %199, %202 : vector<8x1xf32>
    %204 = vector.broadcast %203 : vector<8x1xf32> to vector<8x8xf32>
    %205 = arith.mulf %196, %204 : vector<8x8xf32>
    %cst_96 = arith.constant dense<0.000000e+00> : vector<8x16xf32>
    %206 = tpu.matmul %205, %190, %cst_96 {dimension_numbers = #tpu.dot_dimension_numbers<[1], [0], [0], [1], [0, 0, 1, 1], [], []>} : vector<8x8xf32>, vector<8x16xf32>, vector<8x16xf32> -> vector<8x16xf32>
    %c1_97 = arith.constant 1 : index
    %c0_98 = arith.constant 0 : index
    %c0_99 = arith.constant 0 : index
    %207 = vector.load %arg6[%c1_97, %c0_98, %c0_99] : memref<2x64x32xf32, #tpu.memory_space<vmem>>, vector<1x16x32xf32>
    %208 = vector.shape_cast %207 : vector<1x16x32xf32> to vector<16x32xf32>
    %cst_100 = arith.constant dense<0.000000e+00> : vector<8x32xf32>
    %209 = tpu.matmul %206, %208, %cst_100 {dimension_numbers = #tpu.dot_dimension_numbers<[1], [0], [0], [1], [0, 0, 1, 1], [], []>} : vector<8x16xf32>, vector<16x32xf32>, vector<8x32xf32> -> vector<8x32xf32>
    %210 = arith.addf %185, %209 : vector<8x32xf32>
    %211 = vector.extract_strided_slice %184 {offsets = [0, 16], sizes = [8, 16], strides = [1, 1]} : vector<8x192xf32> to vector<8x16xf32>
    %cst_101 = arith.constant 0.574349165 : f32
    %212 = vector.broadcast %cst_101 : f32 to vector<8x16xf32>
    %213 = arith.mulf %211, %212 : vector<8x16xf32>
    %214 = vector.extract_strided_slice %184 {offsets = [0, 80], sizes = [8, 16], strides = [1, 1]} : vector<8x192xf32> to vector<8x16xf32>
    %215 = vector.extract_strided_slice %184 {offsets = [0, 144], sizes = [8, 16], strides = [1, 1]} : vector<8x192xf32> to vector<8x16xf32>
    %cst_102 = arith.constant dense<0.000000e+00> : vector<8x8xf32>
    %216 = tpu.matmul %213, %214, %cst_102 {dimension_numbers = #tpu.dot_dimension_numbers<[1], [1], [0], [0], [0, 0, 1, 0], [], []>} : vector<8x16xf32>, vector<8x16xf32>, vector<8x8xf32> -> vector<8x8xf32>
    %cst_103 = arith.constant dense<0xFF800000> : vector<8xf32>
    %217 = vector.multi_reduction <maximumf>, %216, %cst_103 [1] : vector<8x8xf32> to vector<8xf32>
    %218 = vector.shape_cast %217 : vector<8xf32> to vector<8x1xf32>
    %219 = vector.broadcast %218 : vector<8x1xf32> to vector<8x8xf32>
    %220 = arith.subf %216, %219 : vector<8x8xf32>
    %221 = math.exp %220 : vector<8x8xf32>
    %cst_104 = arith.constant dense<0.000000e+00> : vector<8xf32>
    %222 = vector.multi_reduction <add>, %221, %cst_104 [1] : vector<8x8xf32> to vector<8xf32>
    %223 = vector.shape_cast %222 : vector<8xf32> to vector<8x1xf32>
    %224 = tpu.reciprocal %223 {approx = true} : vector<8x1xf32> -> vector<8x1xf32>
    %225 = arith.mulf %223, %224 : vector<8x1xf32>
    %cst_105 = arith.constant 2.000000e+00 : f32
    %226 = vector.broadcast %cst_105 : f32 to vector<8x1xf32>
    %227 = arith.subf %226, %225 : vector<8x1xf32>
    %228 = arith.mulf %224, %227 : vector<8x1xf32>
    %229 = vector.broadcast %228 : vector<8x1xf32> to vector<8x8xf32>
    %230 = arith.mulf %221, %229 : vector<8x8xf32>
    %cst_106 = arith.constant dense<0.000000e+00> : vector<8x16xf32>
    %231 = tpu.matmul %230, %215, %cst_106 {dimension_numbers = #tpu.dot_dimension_numbers<[1], [0], [0], [1], [0, 0, 1, 1], [], []>} : vector<8x8xf32>, vector<8x16xf32>, vector<8x16xf32> -> vector<8x16xf32>
    %c1_107 = arith.constant 1 : index
    %c16_108 = arith.constant 16 : index
    %c0_109 = arith.constant 0 : index
    %232 = vector.load %arg6[%c1_107, %c16_108, %c0_109] : memref<2x64x32xf32, #tpu.memory_space<vmem>>, vector<1x16x32xf32>
    %233 = vector.shape_cast %232 : vector<1x16x32xf32> to vector<16x32xf32>
    %cst_110 = arith.constant dense<0.000000e+00> : vector<8x32xf32>
    %234 = tpu.matmul %231, %233, %cst_110 {dimension_numbers = #tpu.dot_dimension_numbers<[1], [0], [0], [1], [0, 0, 1, 1], [], []>} : vector<8x16xf32>, vector<16x32xf32>, vector<8x32xf32> -> vector<8x32xf32>
    %235 = arith.addf %210, %234 : vector<8x32xf32>
    %236 = vector.extract_strided_slice %184 {offsets = [0, 32], sizes = [8, 16], strides = [1, 1]} : vector<8x192xf32> to vector<8x16xf32>
    %cst_111 = arith.constant 0.574349165 : f32
    %237 = vector.broadcast %cst_111 : f32 to vector<8x16xf32>
    %238 = arith.mulf %236, %237 : vector<8x16xf32>
    %239 = vector.extract_strided_slice %184 {offsets = [0, 96], sizes = [8, 16], strides = [1, 1]} : vector<8x192xf32> to vector<8x16xf32>
    %240 = vector.extract_strided_slice %184 {offsets = [0, 160], sizes = [8, 16], strides = [1, 1]} : vector<8x192xf32> to vector<8x16xf32>
    %cst_112 = arith.constant dense<0.000000e+00> : vector<8x8xf32>
    %241 = tpu.matmul %238, %239, %cst_112 {dimension_numbers = #tpu.dot_dimension_numbers<[1], [1], [0], [0], [0, 0, 1, 0], [], []>} : vector<8x16xf32>, vector<8x16xf32>, vector<8x8xf32> -> vector<8x8xf32>
    %cst_113 = arith.constant dense<0xFF800000> : vector<8xf32>
    %242 = vector.multi_reduction <maximumf>, %241, %cst_113 [1] : vector<8x8xf32> to vector<8xf32>
    %243 = vector.shape_cast %242 : vector<8xf32> to vector<8x1xf32>
    %244 = vector.broadcast %243 : vector<8x1xf32> to vector<8x8xf32>
    %245 = arith.subf %241, %244 : vector<8x8xf32>
    %246 = math.exp %245 : vector<8x8xf32>
    %cst_114 = arith.constant dense<0.000000e+00> : vector<8xf32>
    %247 = vector.multi_reduction <add>, %246, %cst_114 [1] : vector<8x8xf32> to vector<8xf32>
    %248 = vector.shape_cast %247 : vector<8xf32> to vector<8x1xf32>
    %249 = tpu.reciprocal %248 {approx = true} : vector<8x1xf32> -> vector<8x1xf32>
    %250 = arith.mulf %248, %249 : vector<8x1xf32>
    %cst_115 = arith.constant 2.000000e+00 : f32
    %251 = vector.broadcast %cst_115 : f32 to vector<8x1xf32>
    %252 = arith.subf %251, %250 : vector<8x1xf32>
    %253 = arith.mulf %249, %252 : vector<8x1xf32>
    %254 = vector.broadcast %253 : vector<8x1xf32> to vector<8x8xf32>
    %255 = arith.mulf %246, %254 : vector<8x8xf32>
    %cst_116 = arith.constant dense<0.000000e+00> : vector<8x16xf32>
    %256 = tpu.matmul %255, %240, %cst_116 {dimension_numbers = #tpu.dot_dimension_numbers<[1], [0], [0], [1], [0, 0, 1, 1], [], []>} : vector<8x8xf32>, vector<8x16xf32>, vector<8x16xf32> -> vector<8x16xf32>
    %c1_117 = arith.constant 1 : index
    %c32_118 = arith.constant 32 : index
    %c0_119 = arith.constant 0 : index
    %257 = vector.load %arg6[%c1_117, %c32_118, %c0_119] : memref<2x64x32xf32, #tpu.memory_space<vmem>>, vector<1x16x32xf32>
    %258 = vector.shape_cast %257 : vector<1x16x32xf32> to vector<16x32xf32>
    %cst_120 = arith.constant dense<0.000000e+00> : vector<8x32xf32>
    %259 = tpu.matmul %256, %258, %cst_120 {dimension_numbers = #tpu.dot_dimension_numbers<[1], [0], [0], [1], [0, 0, 1, 1], [], []>} : vector<8x16xf32>, vector<16x32xf32>, vector<8x32xf32> -> vector<8x32xf32>
    %260 = arith.addf %235, %259 : vector<8x32xf32>
    %261 = vector.extract_strided_slice %184 {offsets = [0, 48], sizes = [8, 16], strides = [1, 1]} : vector<8x192xf32> to vector<8x16xf32>
    %cst_121 = arith.constant 0.574349165 : f32
    %262 = vector.broadcast %cst_121 : f32 to vector<8x16xf32>
    %263 = arith.mulf %261, %262 : vector<8x16xf32>
    %264 = vector.extract_strided_slice %184 {offsets = [0, 112], sizes = [8, 16], strides = [1, 1]} : vector<8x192xf32> to vector<8x16xf32>
    %265 = vector.extract_strided_slice %184 {offsets = [0, 176], sizes = [8, 16], strides = [1, 1]} : vector<8x192xf32> to vector<8x16xf32>
    %cst_122 = arith.constant dense<0.000000e+00> : vector<8x8xf32>
    %266 = tpu.matmul %263, %264, %cst_122 {dimension_numbers = #tpu.dot_dimension_numbers<[1], [1], [0], [0], [0, 0, 1, 0], [], []>} : vector<8x16xf32>, vector<8x16xf32>, vector<8x8xf32> -> vector<8x8xf32>
    %cst_123 = arith.constant dense<0xFF800000> : vector<8xf32>
    %267 = vector.multi_reduction <maximumf>, %266, %cst_123 [1] : vector<8x8xf32> to vector<8xf32>
    %268 = vector.shape_cast %267 : vector<8xf32> to vector<8x1xf32>
    %269 = vector.broadcast %268 : vector<8x1xf32> to vector<8x8xf32>
    %270 = arith.subf %266, %269 : vector<8x8xf32>
    %271 = math.exp %270 : vector<8x8xf32>
    %cst_124 = arith.constant dense<0.000000e+00> : vector<8xf32>
    %272 = vector.multi_reduction <add>, %271, %cst_124 [1] : vector<8x8xf32> to vector<8xf32>
    %273 = vector.shape_cast %272 : vector<8xf32> to vector<8x1xf32>
    %274 = tpu.reciprocal %273 {approx = true} : vector<8x1xf32> -> vector<8x1xf32>
    %275 = arith.mulf %273, %274 : vector<8x1xf32>
    %cst_125 = arith.constant 2.000000e+00 : f32
    %276 = vector.broadcast %cst_125 : f32 to vector<8x1xf32>
    %277 = arith.subf %276, %275 : vector<8x1xf32>
    %278 = arith.mulf %274, %277 : vector<8x1xf32>
    %279 = vector.broadcast %278 : vector<8x1xf32> to vector<8x8xf32>
    %280 = arith.mulf %271, %279 : vector<8x8xf32>
    %cst_126 = arith.constant dense<0.000000e+00> : vector<8x16xf32>
    %281 = tpu.matmul %280, %265, %cst_126 {dimension_numbers = #tpu.dot_dimension_numbers<[1], [0], [0], [1], [0, 0, 1, 1], [], []>} : vector<8x8xf32>, vector<8x16xf32>, vector<8x16xf32> -> vector<8x16xf32>
    %c1_127 = arith.constant 1 : index
    %c48_128 = arith.constant 48 : index
    %c0_129 = arith.constant 0 : index
    %282 = vector.load %arg6[%c1_127, %c48_128, %c0_129] : memref<2x64x32xf32, #tpu.memory_space<vmem>>, vector<1x16x32xf32>
    %283 = vector.shape_cast %282 : vector<1x16x32xf32> to vector<16x32xf32>
    %cst_130 = arith.constant dense<0.000000e+00> : vector<8x32xf32>
    %284 = tpu.matmul %281, %283, %cst_130 {dimension_numbers = #tpu.dot_dimension_numbers<[1], [0], [0], [1], [0, 0, 1, 1], [], []>} : vector<8x16xf32>, vector<16x32xf32>, vector<8x32xf32> -> vector<8x32xf32>
    %285 = arith.addf %260, %284 : vector<8x32xf32>
    %c1_131 = arith.constant 1 : index
    %c0_132 = arith.constant 0 : index
    %c0_133 = arith.constant 0 : index
    %286 = vector.load %arg7[%c1_131, %c0_132, %c0_133] : memref<2x1x32xf32, #tpu.memory_space<vmem>>, vector<1x1x32xf32>
    %287 = vector.shape_cast %286 : vector<1x1x32xf32> to vector<1x32xf32>
    %288 = vector.broadcast %287 : vector<1x32xf32> to vector<8x32xf32>
    %289 = arith.addf %285, %288 : vector<8x32xf32>
    %290 = arith.addf %289, %177 : vector<8x32xf32>
    %c1_134 = arith.constant 1 : index
    %c0_135 = arith.constant 0 : index
    %c0_136 = arith.constant 0 : index
    %291 = vector.load %arg8[%c1_134, %c0_135, %c0_136] : memref<2x1x32xf32, #tpu.memory_space<vmem>>, vector<1x1x32xf32>
    %292 = vector.shape_cast %291 : vector<1x1x32xf32> to vector<1x32xf32>
    %c1_137 = arith.constant 1 : index
    %c0_138 = arith.constant 0 : index
    %c0_139 = arith.constant 0 : index
    %293 = vector.load %arg9[%c1_137, %c0_138, %c0_139] : memref<2x1x32xf32, #tpu.memory_space<vmem>>, vector<1x1x32xf32>
    %294 = vector.shape_cast %293 : vector<1x1x32xf32> to vector<1x32xf32>
    %cst_140 = arith.constant dense<0.000000e+00> : vector<8xf32>
    %295 = vector.multi_reduction <add>, %290, %cst_140 [1] : vector<8x32xf32> to vector<8xf32>
    %296 = vector.shape_cast %295 : vector<8xf32> to vector<8x1xf32>
    %cst_141 = arith.constant 3.200000e+01 : f32
    %297 = vector.broadcast %cst_141 : f32 to vector<8x1xf32>
    %298 = arith.divf %296, %297 : vector<8x1xf32>
    %299 = vector.broadcast %298 : vector<8x1xf32> to vector<8x32xf32>
    %300 = arith.subf %290, %299 : vector<8x32xf32>
    %301 = arith.mulf %300, %300 : vector<8x32xf32>
    %cst_142 = arith.constant dense<0.000000e+00> : vector<8xf32>
    %302 = vector.multi_reduction <add>, %301, %cst_142 [1] : vector<8x32xf32> to vector<8xf32>
    %303 = vector.shape_cast %302 : vector<8xf32> to vector<8x1xf32>
    %cst_143 = arith.constant 3.200000e+01 : f32
    %304 = vector.broadcast %cst_143 : f32 to vector<8x1xf32>
    %305 = arith.divf %303, %304 : vector<8x1xf32>
    %cst_144 = arith.constant 9.99999974E-6 : f32
    %306 = vector.broadcast %cst_144 : f32 to vector<8x1xf32>
    %307 = arith.addf %305, %306 : vector<8x1xf32>
    %308 = math.rsqrt %307 : vector<8x1xf32>
    %309 = vector.broadcast %308 : vector<8x1xf32> to vector<8x32xf32>
    %310 = arith.mulf %300, %309 : vector<8x32xf32>
    %311 = vector.broadcast %292 : vector<1x32xf32> to vector<8x32xf32>
    %312 = arith.mulf %310, %311 : vector<8x32xf32>
    %313 = vector.broadcast %294 : vector<1x32xf32> to vector<8x32xf32>
    %314 = arith.addf %312, %313 : vector<8x32xf32>
    %c1_145 = arith.constant 1 : index
    %c0_146 = arith.constant 0 : index
    %c0_147 = arith.constant 0 : index
    %315 = vector.load %arg10[%c1_145, %c0_146, %c0_147] : memref<2x32x32xf32, #tpu.memory_space<vmem>>, vector<1x32x32xf32>
    %316 = vector.shape_cast %315 : vector<1x32x32xf32> to vector<32x32xf32>
    %cst_148 = arith.constant dense<0.000000e+00> : vector<8x32xf32>
    %317 = tpu.matmul %314, %316, %cst_148 {dimension_numbers = #tpu.dot_dimension_numbers<[1], [0], [0], [1], [0, 0, 1, 1], [], []>} : vector<8x32xf32>, vector<32x32xf32>, vector<8x32xf32> -> vector<8x32xf32>
    %c1_149 = arith.constant 1 : index
    %c0_150 = arith.constant 0 : index
    %c0_151 = arith.constant 0 : index
    %318 = vector.load %arg11[%c1_149, %c0_150, %c0_151] : memref<2x1x32xf32, #tpu.memory_space<vmem>>, vector<1x1x32xf32>
    %319 = vector.shape_cast %318 : vector<1x1x32xf32> to vector<1x32xf32>
    %320 = vector.broadcast %319 : vector<1x32xf32> to vector<8x32xf32>
    %321 = arith.addf %317, %320 : vector<8x32xf32>
    %cst_152 = arith.constant 0.000000e+00 : f32
    %322 = vector.broadcast %cst_152 : f32 to vector<8x32xf32>
    %323 = arith.maximumf %321, %322 : vector<8x32xf32>
    %324 = arith.addf %323, %314 : vector<8x32xf32>
    %c1_153 = arith.constant 1 : index
    %c0_154 = arith.constant 0 : index
    %c0_155 = arith.constant 0 : index
    %325 = vector.load %arg12[%c1_153, %c0_154, %c0_155] : memref<2x1x32xf32, #tpu.memory_space<vmem>>, vector<1x1x32xf32>
    %326 = vector.shape_cast %325 : vector<1x1x32xf32> to vector<1x32xf32>
    %c1_156 = arith.constant 1 : index
    %c0_157 = arith.constant 0 : index
    %c0_158 = arith.constant 0 : index
    %327 = vector.load %arg13[%c1_156, %c0_157, %c0_158] : memref<2x1x32xf32, #tpu.memory_space<vmem>>, vector<1x1x32xf32>
    %328 = vector.shape_cast %327 : vector<1x1x32xf32> to vector<1x32xf32>
    %cst_159 = arith.constant dense<0.000000e+00> : vector<8xf32>
    %329 = vector.multi_reduction <add>, %324, %cst_159 [1] : vector<8x32xf32> to vector<8xf32>
    %330 = vector.shape_cast %329 : vector<8xf32> to vector<8x1xf32>
    %cst_160 = arith.constant 3.200000e+01 : f32
    %331 = vector.broadcast %cst_160 : f32 to vector<8x1xf32>
    %332 = arith.divf %330, %331 : vector<8x1xf32>
    %333 = vector.broadcast %332 : vector<8x1xf32> to vector<8x32xf32>
    %334 = arith.subf %324, %333 : vector<8x32xf32>
    %335 = arith.mulf %334, %334 : vector<8x32xf32>
    %cst_161 = arith.constant dense<0.000000e+00> : vector<8xf32>
    %336 = vector.multi_reduction <add>, %335, %cst_161 [1] : vector<8x32xf32> to vector<8xf32>
    %337 = vector.shape_cast %336 : vector<8xf32> to vector<8x1xf32>
    %cst_162 = arith.constant 3.200000e+01 : f32
    %338 = vector.broadcast %cst_162 : f32 to vector<8x1xf32>
    %339 = arith.divf %337, %338 : vector<8x1xf32>
    %cst_163 = arith.constant 9.99999974E-6 : f32
    %340 = vector.broadcast %cst_163 : f32 to vector<8x1xf32>
    %341 = arith.addf %339, %340 : vector<8x1xf32>
    %342 = math.rsqrt %341 : vector<8x1xf32>
    %343 = vector.broadcast %342 : vector<8x1xf32> to vector<8x32xf32>
    %344 = arith.mulf %334, %343 : vector<8x32xf32>
    %345 = vector.broadcast %326 : vector<1x32xf32> to vector<8x32xf32>
    %346 = arith.mulf %344, %345 : vector<8x32xf32>
    %347 = vector.broadcast %328 : vector<1x32xf32> to vector<8x32xf32>
    %348 = arith.addf %346, %347 : vector<8x32xf32>
    %c0_164 = arith.constant 0 : index
    %c0_165 = arith.constant 0 : index
    %349 = vector.load %arg14[%c0_164, %c0_165] : memref<1x32xf32, #tpu.memory_space<vmem>>, vector<1x32xf32>
    %c0_166 = arith.constant 0 : index
    %c0_167 = arith.constant 0 : index
    %350 = vector.load %arg15[%c0_166, %c0_167] : memref<1x32xf32, #tpu.memory_space<vmem>>, vector<1x32xf32>
    %cst_168 = arith.constant dense<0.000000e+00> : vector<8xf32>
    %351 = vector.multi_reduction <add>, %348, %cst_168 [1] : vector<8x32xf32> to vector<8xf32>
    %352 = vector.shape_cast %351 : vector<8xf32> to vector<8x1xf32>
    %cst_169 = arith.constant 3.200000e+01 : f32
    %353 = vector.broadcast %cst_169 : f32 to vector<8x1xf32>
    %354 = arith.divf %352, %353 : vector<8x1xf32>
    %355 = vector.broadcast %354 : vector<8x1xf32> to vector<8x32xf32>
    %356 = arith.subf %348, %355 : vector<8x32xf32>
    %357 = arith.mulf %356, %356 : vector<8x32xf32>
    %cst_170 = arith.constant dense<0.000000e+00> : vector<8xf32>
    %358 = vector.multi_reduction <add>, %357, %cst_170 [1] : vector<8x32xf32> to vector<8xf32>
    %359 = vector.shape_cast %358 : vector<8xf32> to vector<8x1xf32>
    %cst_171 = arith.constant 3.200000e+01 : f32
    %360 = vector.broadcast %cst_171 : f32 to vector<8x1xf32>
    %361 = arith.divf %359, %360 : vector<8x1xf32>
    %cst_172 = arith.constant 9.99999974E-6 : f32
    %362 = vector.broadcast %cst_172 : f32 to vector<8x1xf32>
    %363 = arith.addf %361, %362 : vector<8x1xf32>
    %364 = math.rsqrt %363 : vector<8x1xf32>
    %365 = vector.broadcast %364 : vector<8x1xf32> to vector<8x32xf32>
    %366 = arith.mulf %356, %365 : vector<8x32xf32>
    %367 = vector.broadcast %349 : vector<1x32xf32> to vector<8x32xf32>
    %368 = arith.mulf %366, %367 : vector<8x32xf32>
    %369 = vector.broadcast %350 : vector<1x32xf32> to vector<8x32xf32>
    %370 = arith.addf %368, %369 : vector<8x32xf32>
    %c0_173 = arith.constant 0 : index
    %c0_174 = arith.constant 0 : index
    %c0_175 = arith.constant 0 : index
    %371 = vector.load %arg16[%c0_173, %c0_174, %c0_175] : memref<1x8x32xf32, #tpu.memory_space<vmem>>, vector<1x8x32xf32>
    %372 = vector.shape_cast %371 : vector<1x8x32xf32> to vector<8x32xf32>
    %373 = vector.shape_cast %370 : vector<8x32xf32> to vector<1x8x32xf32>
    tpu.vector_store %arg16[%c0_173, %c0_174, %c0_175], %373 {strides = array<i32>} : memref<1x8x32xf32, #tpu.memory_space<vmem>>, vector<1x8x32xf32>,
    return
  }
  func.func @transform_0(%arg0: i32) -> (i32, i32, i32) {
    %c0_i32 = arith.constant 0 : i32
    %c0_i32_0 = arith.constant 0 : i32
    %c0_i32_1 = arith.constant 0 : i32
    return %arg0, %c0_i32, %c0_i32_0 : i32, i32, i32
  }
  func.func @transform_1(%arg0: i32) -> (i32, i32) {
    %c0_i32 = arith.constant 0 : i32
    %c0_i32_0 = arith.constant 0 : i32
    %c0_i32_1 = arith.constant 0 : i32
    return %c0_i32, %c0_i32_0 : i32, i32
  }
  func.func @transform_2(%arg0: i32) -> (i32, i32) {
    %c0_i32 = arith.constant 0 : i32
    %c0_i32_0 = arith.constant 0 : i32
    %c0_i32_1 = arith.constant 0 : i32
    return %c0_i32, %c0_i32_0 : i32, i32
  }
  func.func @transform_3(%arg0: i32) -> (i32, i32, i32) {
    %c0_i32 = arith.constant 0 : i32
    %c0_i32_0 = arith.constant 0 : i32
    %c0_i32_1 = arith.constant 0 : i32
    %c0_i32_2 = arith.constant 0 : i32
    return %c0_i32, %c0_i32_0, %c0_i32_1 : i32, i32, i32
  }
  func.func @transform_4(%arg0: i32) -> (i32, i32, i32) {
    %c0_i32 = arith.constant 0 : i32
    %c0_i32_0 = arith.constant 0 : i32
    %c0_i32_1 = arith.constant 0 : i32
    %c0_i32_2 = arith.constant 0 : i32
    return %c0_i32, %c0_i32_0, %c0_i32_1 : i32, i32, i32
  }
  func.func @transform_5(%arg0: i32) -> (i32, i32, i32) {
    %c0_i32 = arith.constant 0 : i32
    %c0_i32_0 = arith.constant 0 : i32
    %c0_i32_1 = arith.constant 0 : i32
    %c0_i32_2 = arith.constant 0 : i32
    return %c0_i32, %c0_i32_0, %c0_i32_1 : i32, i32, i32
  }
  func.func @transform_6(%arg0: i32) -> (i32, i32, i32) {
    %c0_i32 = arith.constant 0 : i32
    %c0_i32_0 = arith.constant 0 : i32
    %c0_i32_1 = arith.constant 0 : i32
    %c0_i32_2 = arith.constant 0 : i32
    return %c0_i32, %c0_i32_0, %c0_i32_1 : i32, i32, i32
  }
  func.func @transform_7(%arg0: i32) -> (i32, i32, i32) {
    %c0_i32 = arith.constant 0 : i32
    %c0_i32_0 = arith.constant 0 : i32
    %c0_i32_1 = arith.constant 0 : i32
    %c0_i32_2 = arith.constant 0 : i32
    return %c0_i32, %c0_i32_0, %c0_i32_1 : i32, i32, i32
  }
  func.func @transform_8(%arg0: i32) -> (i32, i32, i32) {
    %c0_i32 = arith.constant 0 : i32
    %c0_i32_0 = arith.constant 0 : i32
    %c0_i32_1 = arith.constant 0 : i32
    %c0_i32_2 = arith.constant 0 : i32
    return %c0_i32, %c0_i32_0, %c0_i32_1 : i32, i32, i32
  }
  func.func @transform_9(%arg0: i32) -> (i32, i32, i32) {
    %c0_i32 = arith.constant 0 : i32
    %c0_i32_0 = arith.constant 0 : i32
    %c0_i32_1 = arith.constant 0 : i32
    %c0_i32_2 = arith.constant 0 : i32
    return %c0_i32, %c0_i32_0, %c0_i32_1 : i32, i32, i32
  }
  func.func @transform_10(%arg0: i32) -> (i32, i32, i32) {
    %c0_i32 = arith.constant 0 : i32
    %c0_i32_0 = arith.constant 0 : i32
    %c0_i32_1 = arith.constant 0 : i32
    %c0_i32_2 = arith.constant 0 : i32
    return %c0_i32, %c0_i32_0, %c0_i32_1 : i32, i32, i32
  }
  func.func @transform_11(%arg0: i32) -> (i32, i32, i32) {
    %c0_i32 = arith.constant 0 : i32
    %c0_i32_0 = arith.constant 0 : i32
    %c0_i32_1 = arith.constant 0 : i32
    %c0_i32_2 = arith.constant 0 : i32
    return %c0_i32, %c0_i32_0, %c0_i32_1 : i32, i32, i32
  }
  func.func @transform_12(%arg0: i32) -> (i32, i32, i32) {
    %c0_i32 = arith.constant 0 : i32
    %c0_i32_0 = arith.constant 0 : i32
    %c0_i32_1 = arith.constant 0 : i32
    %c0_i32_2 = arith.constant 0 : i32
    return %c0_i32, %c0_i32_0, %c0_i32_1 : i32, i32, i32
  }
  func.func @transform_13(%arg0: i32) -> (i32, i32) {
    %c0_i32 = arith.constant 0 : i32
    %c0_i32_0 = arith.constant 0 : i32
    %c0_i32_1 = arith.constant 0 : i32
    return %c0_i32, %c0_i32_0 : i32, i32
  }
  func.func @transform_14(%arg0: i32) -> (i32, i32) {
    %c0_i32 = arith.constant 0 : i32
    %c0_i32_0 = arith.constant 0 : i32
    %c0_i32_1 = arith.constant 0 : i32
    return %c0_i32, %c0_i32_0 : i32, i32
  }
  func.func @transform_15(%arg0: i32) -> (i32, i32, i32) {
    %c0_i32 = arith.constant 0 : i32
    %c0_i32_0 = arith.constant 0 : i32
    %c0_i32_1 = arith.constant 0 : i32
    return %arg0, %c0_i32, %c0_i32_0 : i32, i32, i32
  }
}

</mosaic_0001>

<bundles_post_ra>
// kernel: tpu_custom_call.1
= control target key start
LH: loop header
LB: loop body
LE: loop exit
PB: predicated region body
PF: predicated region fallthrough
CT: control target
= control target key end

     0   :  { %s4199_s0 = inlined_call_operand.vmem [shape: f32[2,8,4], index: 0, kind: input, shape index: {}]   ;;  %s4200_s1 = inlined_call_operand.vmem [shape: f32[4,32], index: 1, kind: input, shape index: {}]   ;;  %s4201_s2 = inlined_call_operand.vmem [shape: f32[1,32], index: 2, kind: input, shape index: {}]   ;;  %s4202_s3 = inlined_call_operand.vmem [shape: f32[2,32,192], index: 3, kind: input, shape index: {}]   ;;  %s4203_s4 = inlined_call_operand.vmem [shape: f32[2,1,192], index: 4, kind: input, shape index: {}]   ;;  %s4204_s5 = inlined_call_operand.vmem [shape: f32[2,64,32], index: 5, kind: input, shape index: {}]   ;;  %s4205_s6 = inlined_call_operand.vmem [shape: f32[2,1,32], index: 6, kind: input, shape index: {}]   ;;  %s4206_s7 = inlined_call_operand.vmem [shape: f32[2,1,32], index: 7, kind: input, shape index: {}]   ;;  %s4207_s8 = inlined_call_operand.vmem [shape: f32[2,1,32], index: 8, kind: input, shape index: {}]   ;;  %s4208_s9 = inlined_call_operand.vmem [shape: f32[2,32,32], index: 9, kind: input, shape index: {}]   ;;  %s4209_s10 = inlined_call_operand.vmem [shape: f32[2,1,32], index: 10, kind: input, shape index: {}]   ;;  %s4210_s11 = inlined_call_operand.vmem [shape: f32[2,1,32], index: 11, kind: input, shape index: {}]   ;;  %s4211_s12 = inlined_call_operand.vmem [shape: f32[2,1,32], index: 12, kind: input, shape index: {}]   ;;  %s4212_s13 = inlined_call_operand.vmem [shape: f32[1,32], index: 13, kind: input, shape index: {}]   ;;  %s4213_s14 = inlined_call_operand.vmem [shape: f32[1,32], index: 14, kind: input, shape index: {}]   ;;  %s4214_s15 = inlined_call_operand.hbm [shape: f32[2,8,32], index: 15, kind: output, shape index: {}]  }
   0x1   :  { %4228 = sst [smem:[#allocation9_spill]] %s4199_s0 }
   0x2   :  { %4229 = sst [smem:[#allocation10_spill]] %s4200_s1 }
   0x3   :  { %4230 = sst [smem:[#allocation11_spill]] %s4201_s2 }
   0x4   :  { %20 = vsyncpa [#allocation3], 0 }
   0x5   :  { %22 = vsyncpa [#allocation3 + $0x1], 0  ;;  %s3697_s18 = smov 0   ;;  %s3699_s19 = smov 0  }
   0x6   :  { %s3701_s20 = smov 0   ;;  %s3703_s21 = smov 0  }
   0x7 LB: > { %4231 = sst [smem:[#allocation5_spill]] %s3601_s20  ;;  %s3718_s22 = sadd.s32 4294967295, %s3605_s21   ;;  %s3605_s21 = sphi %s3703_s21, %s4247_s21   ;;  %s3601_s20 = sphi %s3701_s20, %s4249_s20   ;;  %s3597_s19 = sphi %s3699_s19, %s4251_s19   ;;  %s3593_s18 = sphi %s3697_s18, %s4250_s18  }
   0x8   : > { %s3134_s23 = sadd.s32 4294967294, %s3605_s21   ;;  %s3722_s24 = sadd.s32 1, %s3605_s21  }
   0x9   : > { %4232 = sst [smem:[#allocation6_spill]] %s3722_s24  ;;  %s355_s25 = sadd.s32 1, %s3601_s20 }
   0xa   : > { %s352_s26 = ssub.s32 %s3605_s21, %s3722_s24  ;;  %p365_p0 = scmp.ne.s32.totalorder %s3601_s20, %s3597_s19 }
   0xb   : > { %p353_p1 = scmp.eq.s32.totalorder %s352_s26, 0  ;;  %p366_p2 = scmp.eq.s32.totalorder %s3718_s22, 1 }
   0xc   : > { %p371_p3 = scmp.ne.s32.totalorder %s3597_s19, %s3593_s18  ;;  %p372_p4 = scmp.eq.s32.totalorder %s3134_s23, 1 }
   0xd   : > { %s3733_s27 = scalar_select %p353_p1, %s3601_s20, %s355_s25  }
   0xe   : > { %p3735_p5 = por %p366_p2, %p365_p0  ;;  %p3739_p6 = por %p372_p4, %p371_p3 }
   0xf   : > { %4233 = sst [smem:[#allocation7_spill]] %s3733_s27  ;;  %p3137_p7 = scmp.ge.s32.totalorder %s3605_s21, 1 }
  0x10   : > { %s4235_s29 = scalar_select %p3739_p6, 1, 0 }
  0x11   : > { %p439_p8 = scmp.lt.s32.totalorder %s3605_s21, 3 }
  0x12   : > { %4236 = sst [smem:[#allocation8_spill]] %s4235_s29 }
  0x13   : > { %p440_p9 = pnand %p3137_p7, %p439_p8 }
  0x14   : > { %s4237_s1 = sld [smem:[#allocation10_spill]] (!%p440_p9)  ;;  %p486_p10 = scmp.lt.s32.totalorder (!%p440_p9), %s3718_s22, 1 }
  0x15   : > { %443 = sbr.rel (%p440_p9) target bundleno = 7576 (0x1d98), region = 80  ;;  %s4238_s0 = sld [smem:[#allocation9_spill]] (!%p440_p9) }
  0x16   : > { %s4239_s2 = sld [smem:[#allocation11_spill]] (!%p440_p9)  ;;  %s4227_s20 = smov (!%p440_p9), 48  }
  0x17   : > { %s4225_s24 = smov (!%p440_p9), 112   ;;  %s4222_s27 = smov (!%p440_p9), 32  }
  0x18   : > { %s4220_s16 = smov (!%p440_p9), 80   ;;  %s4243_s29 = smov (!%p440_p9), 32  }
  0x19   : > { %s483_s23 = sand.u32 (!%p440_p9), 1, %s3597_s19  }
  0x1a   : > { %v491_v0 = vld [vmem:[%s4237_s1] sm:$0xf]  ;;  %vm503_vm0 = vcmask 1043456   ;;  %v3607_v1 = vmov 0.0   ;;  %vm3608_vm1 = vmmov 0   ;;  %v584_v2 = vld [vmem:[%s4202_s3 + $0x38] sm:$0xff]  ;;  %v587_v15 = vlaneseq }
  0x1b   : > { %3292 = vmatprep.subr.mxu0 %v3607_v1  ;;  %3294 = vmatprep.mubr.msk.f32.mxu0 %vm3608_vm1, %v3607_v1  ;;  %v583_v3 = vld [vmem:[%s4202_s3 + $0x30] sm:$0xff]  ;;  %v582_v4 = vld [vmem:[%s4202_s3 + $0x28] sm:$0xff]  ;;  %s487_s1 = scalar_select %p486_p10, %s3718_s22, 1  ;;  %v581_v5 = vld [vmem:[%s4202_s3 + $0x20] sm:$0xff]  ;;  %vm499_vm2 = vcmask 31744   ;;  %vm597_vm3 = vcmask 261120  }
  0x1c   : > { %3293 = vmatpush3.msk.msra.mxu0 %vm503_vm0, %v491_v0  ;;  %625 = vmatprep.subr.mxu1 %v584_v2  ;;  %v580_v6 = vld [vmem:[%s4202_s3 + $0x18] sm:$0xff]  ;;  %v579_v8 = vld [vmem:[%s4202_s3 + $0x10] sm:$0xff]  ;;  %v578_v9 = vld [vmem:[%s4202_s3 + $0x8] sm:$0xff]  ;;  %v3794_v16 = vshrl.u32 %v587_v15, 7  ;;  %vm676_vm4 = vcmask 130048   ;;  %vm752_vm5 = vcmask 64512  }
  0x1d   : > { %626 = vmatpush1.msra.mxu1 %v583_v3  ;;  %665 = vmatprep.mubr.f32.mxu1 %v3607_v1  ;;  %s3139_s17 = sshll.u32 %s487_s1, 3  ;;  %v577_v10 = vld [vmem:[%s4202_s3] sm:$0xff]  ;;  %s4223_s1 = smov 96   ;;  %v1012_v54 = vld [vmem:[%s4204_s5 + $0x18] sm:$0xff]  ;;  %v1011_v55 = vld [vmem:[%s4204_s5 + $0x10] sm:$0xff] }
  0x1e   : > { %627 = vmatprep.subr.mxu1 %v582_v4  ;;  %3297 = vmatprep.subr.mxu0 %v3607_v1  ;;  %s489_s26 = scalar_lea.vmem %s4238_s0, %s3139_s17  ;;  %v3140_v11 = vld [vmem:[%s4239_s2] ss:$0 sm:$0xff]  ;;  %v589_v17 = vsub.s32 0, %v3794_v16  ;;  %v593_v22 = vsub.s32 1, %v3794_v16  ;;  %v841_v63 = vld [vmem:[%s4204_s5 + $0x8] sm:$0xff]  ;;  %s4219_s17 = smov 16  }
  0x1f   : > { %628 = vmatpush1.msra.mxu1 %v581_v5  ;;  %v490_v7 = vld [vmem:[%s489_s26] sm:$0xff]  ;;  %s3609_s26 = smov 64   ;;  %s3138_s25 = sshll.u32 %s483_s23, 3 }
  0x20   : > { %629 = vmatprep.subr.mxu1 %v580_v6  ;;  %3295 = vmatmul.mubr.msk.f32.vlgmr.msra.gmra.mxu0 %vm499_vm2, %v490_v7  ;;  %v585_v18 = vld [vmem:[%s4203_s4] sm:$0x3]  ;;  %s3062_s2 = scalar_lea.sflag [#allocation3], %s483_s23 }
  0x21   : > { %3299 = vmatprep.mubr.msk.f32.mxu0 %vm3608_vm1, %v3607_v1  ;;  %630 = vmatpush1.msra.mxu1 %v579_v8  ;;  %v590_v19 = vrot.slane %v585_v18, %v589_v17  ;;  %v594_v23 = vrot.slane %v585_v18, %v593_v22  ;;  %v840_v0 = vld [vmem:[%s4204_s5] sm:$0xff] }
  0x22   : > { %631 = vmatprep.subr.mxu1 %v578_v9 }
  0x23   : > { %632 = vmatpush1.msra.mxu1 %v577_v10 }
  0x24   : > { %3317 = vmatprep.subr.mxu1 %v3607_v1 }
  0xe0   : > { %v573_v12 = vpop.f32.mrf.mxu0 }
  0xe1   : > { %v3788_v13 = vadd.f32 %v3140_v11, %v573_v12 }
  0xe2   : > { %v3296_v14 = vpop.f32.mrf.mxu0 }
  0xe3   : > { %3143 = vmatmul.mubr.msk.f32.vlgmr.msra.gmra.mxu1 %vm597_vm3, %v3788_v13 }
  0xe4   : > { %3321 = vmatprep.mubr.msk.f32.mxu1 %vm3608_vm1, %v3607_v1  ;;  %3318 = vmatpush3.msra.mxu1 %v1012_v54 }
  0xe5   : > { %3319 = vmatprep.subr.mxu1 %v3607_v1 }
  0xe6   : > { %3320 = vmatpush3.msra.mxu1 %v1011_v55  ;;  %v1571_v55 = vld [vmem:[%s4204_s5 + $0x30] sm:$0xff] }
  0xe7   : > { %3331 = vmatprep.subr.mxu1 %v3607_v1 }
 0x1a3   : > { %v667_v20 = vpop.f32.mrf.mxu1 }
 0x1a4   : > { %v3802_v21 = vadd.f32 %v667_v20, %v590_v19 }
 0x1a5   : > { %v669_v24 = vpop.f32.mrf.mxu1 }
 0x1a6   : > { %674 = vrot.lane.b32.xlu0 %v3802_v21, %s3609_s26  ;;  %v3811_v26 = vmul.f32 0.57434916, %v3802_v21  ;;  %v3814_v27 = vadd.f32 %v669_v24, %v594_v23  ;;  %v1328_v24 = vld [vmem:[%s4204_s5 + $0x28] sm:$0xff] }
 0x218   : > { %v675_v25 = vpop.permute.xlu0 %674 }
 0x219   : > { %3298 = vmatpush3.xpose.msk.msra.mxu0 %vm676_vm4, %v675_v25 }
 0x21a   : > { %3302 = vmatprep.subr.mxu0 %v3607_v1 }
 0x21c   : > { %3300 = vmatmul.mubr.msk.f32.vlgmr.msra.gmra.mxu0 %vm676_vm4, %v3811_v26 }
 0x21d   : > { %3303 = vmatpush3.msra.mxu0 %v3814_v27  ;;  %3304 = vmatprep.mubr.msk.f32.mxu0 %vm3608_vm1, %v3607_v1 }
 0x21e   : > { %3307 = vmatprep.subr.mxu0 %v3607_v1 }
 0x2dc   : > { %v748_v28 = vpop.f32.mrf.mxu0 }
 0x2dd   : > { %v753_v29 = vsel %vm752_vm5, %v748_v28, -inf }
 0x2de   : > { %754 = vmax.xlane.f32.xlu0 %v753_v29  ;;  %v3301_v30 = vpop.f32.mrf.mxu0 }
 0x367   : > { %v755_v31 = vpop.xlane.xlu0 %754 }
 0x368   : > { %v756_v32 = vsub.f32 %v748_v28, %v755_v31 }
 0x36a   : > { %v757_v33 = vmul.f32 1.442695, %v756_v32 }
 0x36c   : > { %3503 = vpow2.f32 %v757_v33  ;;  %v1327_v33 = vld [vmem:[%s4204_s5 + $0x20] sm:$0xff] }
 0x379   : > { %v3504_v34 = vpop.eup %3503 }
 0x37a   : > { %v759_v35 = vsel %vm752_vm5, %v3504_v34, 0.0 }
 0x37b   : > { %760 = vadd.xlane.f32.xlu1 %v759_v35 }
 0x38c   : > { %844 = vrot.lane.b32.xlu1 %v3802_v21, %s4227_s20  ;;  %s485_s20 = scalar_lea.vmem [#allocation2], %s3138_s25 }
 0x390   : > { %842 = vrot.lane.b32.xlu1 %v3811_v26, %s4225_s24 }
 0x404   : > { %v761_v36 = vpop.xlane.xlu1 %760 }
 0x405   : > { %3505 = vrcp.f32 %v761_v36 }
 0x408   : > { %v845_v41 = vpop.permute.xlu1 %844 }
 0x40c   : > { %v843_v43 = vpop.permute.xlu1 %842 }
 0x412   : > { %v3506_v37 = vpop.eup %3505 }
 0x413   : > { %v763_v38 = vmul.f32 %v3506_v37, %v761_v36 }
 0x415   : > { %v764_v39 = vsub.f32 2.0, %v763_v38 }
 0x417   : > { %v765_v40 = vmul.f32 %v3506_v37, %v764_v39 }
 0x419   : > { %v766_v42 = vmul.f32 %v3504_v34, %v765_v40 }
 0x41b   : > { %3305 = vmatmul.mubr.msk.f32.vlgmr.msra.gmra.mxu0 %vm752_vm5, %v766_v42 }
 0x41c   : > { %3308 = vmatpush3.xpose.msk.msra.mxu0 %vm676_vm4, %v845_v41  ;;  %3309 = vmatprep.mubr.msk.f32.mxu0 %vm3608_vm1, %v3607_v1 }
 0x41d   : > { %3312 = vmatprep.subr.mxu0 %v3607_v1 }
 0x41f   : > { %3310 = vmatmul.mubr.msk.f32.vlgmr.msra.gmra.mxu0 %vm676_vm4, %v843_v43 }
 0x420   : > { %3314 = vmatprep.mubr.msk.f32.mxu0 %vm3608_vm1, %v3607_v1 }
 0x4db   : > { %v836_v44 = vpop.f32.mrf.mxu0 }
 0x4dd   : > { %v3306_v45 = vpop.f32.mrf.mxu0 }
 0x4df   : > { %v916_v46 = vpop.f32.mrf.mxu0 }
 0x4e0   : > { %v920_v47 = vsel %vm752_vm5, %v916_v46, -inf }
 0x4e1   : > { %921 = vmax.xlane.f32.xlu1 %v920_v47  ;;  %v3311_v48 = vpop.f32.mrf.mxu0 }
 0x4f2   : > { %1159 = vrot.lane.b32.xlu1 %v3811_v26, %s4223_s1 }
 0x56a   : > { %v922_v49 = vpop.xlane.xlu1 %921 }
 0x56b   : > { %v923_v50 = vsub.f32 %v916_v46, %v922_v49 }
 0x56d   : > { %v924_v51 = vmul.f32 1.442695, %v923_v50 }
 0x56e   : > { %v1160_v5 = vpop.permute.xlu1 %1159 }
 0x56f   : > { %3507 = vpow2.f32 %v924_v51 }
 0x57c   : > { %v3508_v52 = vpop.eup %3507 }
 0x57d   : > { %v926_v53 = vsel %vm752_vm5, %v3508_v52, 0.0 }
 0x57e   : > { %927 = vadd.xlane.f32.xlu0 %v926_v53 }
 0x594   : > { %935 = vrot.lane.b32.xlu0 %v3814_v27, %s4225_s24  ;;  %s3075_s24 = sshll.u32 %s485_s20, 4  ;;  %s3076_s24 = int_to_ptr.vmem [resolvable:$true] %s3075_s24 }
 0x598   : > { %1161 = vrot.lane.b32.xlu0 %v3802_v21, %s4222_s27 }
 0x607   : > { %v928_v56 = vpop.xlane.xlu0 %927 }
 0x608   : > { %3509 = vrcp.f32 %v928_v56 }
 0x60b   : > { %v936_v57 = vpop.permute.xlu0 %935 }
 0x60c   : > { %3313 = vmatpush3.msra.mxu0 %v936_v57 }
 0x60d   : > { %3324 = vmatprep.subr.mxu0 %v3607_v1 }
 0x60f   : > { %v1162_v3 = vpop.permute.xlu0 %1161 }
 0x615   : > { %v3510_v58 = vpop.eup %3509 }
 0x616   : > { %v930_v59 = vmul.f32 %v3510_v58, %v928_v56 }
 0x618   : > { %v931_v60 = vsub.f32 2.0, %v930_v59  ;;  %v3160_v59 = vld [vmem:[%s4205_s6] ss:$0 sm:$0xff] }
 0x61a   : > { %v932_v61 = vmul.f32 %v3510_v58, %v931_v60 }
 0x61c   : > { %v933_v62 = vmul.f32 %v3508_v52, %v932_v61 }
 0x61e   : > { %3315 = vmatmul.mubr.msk.f32.vlgmr.msra.gmra.mxu0 %vm752_vm5, %v933_v62 }
 0x61f   : > { %3325 = vmatpush3.msra.mxu0 %v841_v63  ;;  %3328 = vmatprep.mubr.msk.f32.mxu0 %vm3608_vm1, %v3607_v1 }
 0x620   : > { %3326 = vmatprep.subr.mxu0 %v3607_v1 }
 0x621   : > { %3327 = vmatpush3.msra.mxu0 %v840_v0 }
 0x622   : > { %3329 = vmatmul.mubr.msk.f32.vlgmr.msra.gmra.mxu0 %vm676_vm4, %v836_v44  ;;  %3336 = vmatprep.subr.mxu0 %v3607_v1 }
 0x623   : > { %3338 = vmatprep.mubr.msk.f32.mxu0 %vm3608_vm1, %v3607_v1 }
 0x6de   : > { %v1007_v2 = vpop.f32.mrf.mxu0 }
 0x6df   : > { %3322 = vmatmul.mubr.msk.f32.vlgmr.msra.gmra.mxu1 %vm676_vm4, %v1007_v2 }
 0x6e0   : > { %3332 = vmatpush3.xpose.msk.msra.mxu1 %vm676_vm4, %v1162_v3  ;;  %v3316_v4 = vpop.f32.mrf.mxu0  ;;  %3333 = vmatprep.mubr.msk.f32.mxu1 %vm3608_vm1, %v3607_v1 }
 0x6e1   : > { %3341 = vmatprep.subr.mxu1 %v3607_v1 }
 0x6e2   : > { %v3872_v6 = vpop.f32.mrf.mxu0 }
 0x6e3   : > { %3334 = vmatmul.mubr.msk.f32.vlgmr.msra.gmra.mxu1 %vm676_vm4, %v1160_v5 }
 0x6e4   : > { %v3330_v7 = vpop.f32.mrf.mxu0  ;;  %3345 = vmatprep.mubr.msk.f32.mxu1 %vm3608_vm1, %v3607_v1  ;;  %3342 = vmatpush3.msra.mxu1 %v1328_v24  ;;  %v3163_v24 = vld [vmem:[%s4209_s10] ss:$0 sm:$0xff] }
 0x6e5   : > { %3343 = vmatprep.subr.mxu1 %v3607_v1  ;;  %v1689_v7 = vld [vmem:[%s4208_s9 + $0x18] sm:$0xff] }
 0x6e6   : > { %3344 = vmatpush3.msra.mxu1 %v1327_v33 }
 0x6e7   : > { %3353 = vmatprep.subr.mxu1 %v3607_v1 }
 0x79f   : > { %v1082_v8 = vpop.f32.mrf.mxu1 }
 0x7a0   : > { %v1156_v45 = vadd.f32 %v3872_v6, %v1082_v8  ;;  %v1688_v8 = vld [vmem:[%s4208_s9 + $0x10] sm:$0xff] }
 0x7a1   : > { %v3323_v9 = vpop.f32.mrf.mxu1 }
 0x7a2   : > { %v1686_v9 = vld [vmem:[%s4208_s9] sm:$0xff] }
 0x7a3   : > { %v1233_v10 = vpop.f32.mrf.mxu1 }
 0x7a4   : > { %v1237_v11 = vsel %vm752_vm5, %v1233_v10, -inf }
 0x7a5   : > { %1238 = vmax.xlane.f32.xlu0 %v1237_v11  ;;  %v3335_v12 = vpop.f32.mrf.mxu1 }
 0x7bb   : > { %1251 = vrot.lane.b32.xlu0 %v3814_v27, %s4223_s1 }
 0x7bf   : > { %1403 = vrot.lane.b32.xlu0 %v3811_v26, %s4220_s16 }
 0x82e   : > { %v1239_v14 = vpop.xlane.xlu0 %1238 }
 0x82f   : > { %v1240_v15 = vsub.f32 %v1233_v10, %v1239_v14 }
 0x831   : > { %v1241_v18 = vmul.f32 1.442695, %v1240_v15  ;;  %v3161_v15 = vld [vmem:[%s4206_s7] ss:$0 sm:$0xff] }
 0x832   : > { %v1252_v19 = vpop.permute.xlu0 %1251 }
 0x833   : > { %3511 = vpow2.f32 %v1241_v18  ;;  %3337 = vmatpush3.msra.mxu0 %v1252_v19  ;;  %v3162_v19 = vld [vmem:[%s4207_s8] ss:$0 sm:$0xff] }
 0x834   : > { %3348 = vmatprep.subr.mxu0 %v3607_v1 }
 0x840   : > { %v3512_v20 = vpop.eup %3511 }
 0x841   : > { %v1243_v23 = vsel %vm752_vm5, %v3512_v20, 0.0 }
 0x842   : > { %1244 = vadd.xlane.f32.xlu1 %v1243_v23 }
 0x853   : > { %1405 = vrot.lane.b32.xlu1 %v3802_v21, %s4219_s17  ;;  %v1404_v21 = vpop.permute.xlu0 %1403  ;;  %s4241_s17 = smov 112  }
 0x8cb   : > { %v1245_v25 = vpop.xlane.xlu1 %1244 }
 0x8cc   : > { %3513 = vrcp.f32 %v1245_v25 }
 0x8cf   : > { %v1406_v32 = vpop.permute.xlu1 %1405 }
 0x8d9   : > { %v3514_v26 = vpop.eup %3513 }
 0x8da   : > { %v1247_v28 = vmul.f32 %v3514_v26, %v1245_v25 }
 0x8dc   : > { %v1248_v29 = vsub.f32 2.0, %v1247_v28 }
 0x8de   : > { %v1249_v30 = vmul.f32 %v3514_v26, %v1248_v29 }
 0x8e0   : > { %v1250_v31 = vmul.f32 %v3512_v20, %v1249_v30 }
 0x8e2   : > { %3339 = vmatmul.mubr.msk.f32.vlgmr.msra.gmra.mxu0 %vm752_vm5, %v1250_v31 }
 0x8e3   : > { %3349 = vmatpush3.xpose.msk.msra.mxu0 %vm676_vm4, %v1406_v32  ;;  %3350 = vmatprep.mubr.msk.f32.mxu0 %vm3608_vm1, %v3607_v1 }
 0x8e4   : > { %3358 = vmatprep.subr.mxu0 %v3607_v1 }
 0x8e6   : > { %3351 = vmatmul.mubr.msk.f32.vlgmr.msra.gmra.mxu0 %vm676_vm4, %v1404_v21 }
 0x8e7   : > { %3362 = vmatprep.mubr.msk.f32.mxu0 %vm3608_vm1, %v3607_v1 }
 0x9a2   : > { %v1323_v34 = vpop.f32.mrf.mxu0 }
 0x9a3   : > { %3346 = vmatmul.mubr.msk.f32.vlgmr.msra.gmra.mxu1 %vm676_vm4, %v1323_v34 }
 0x9a4   : > { %v3340_v35 = vpop.f32.mrf.mxu0  ;;  %3355 = vmatprep.mubr.msk.f32.mxu1 %vm3608_vm1, %v3607_v1 }
 0x9a6   : > { %v1477_v36 = vpop.f32.mrf.mxu0 }
 0x9a7   : > { %v1481_v37 = vsel %vm752_vm5, %v1477_v36, -inf }
 0x9a8   : > { %1482 = vmax.xlane.f32.xlu0 %v1481_v37  ;;  %v3352_v38 = vpop.f32.mrf.mxu0  ;;  %v3173_v37 = vld [vmem:[%s4202_s3 + $0x70] sm:$0xff] }
 0x9a9   : > { %v3172_v38 = vld [vmem:[%s4202_s3 + $0x68] sm:$0xff] }
 0x9be   : > { %1495 = vrot.lane.b32.xlu0 %v3814_v27, %s4220_s16  ;;  %v1572_v27 = vld [vmem:[%s4204_s5 + $0x38] sm:$0xff]  ;;  %s4240_s16 = smov 48  }
 0x9bf   : > { %3359 = vmatpush3.msra.mxu0 %v1572_v27 }
 0x9c0   : > { %3360 = vmatprep.subr.mxu0 %v3607_v1 }
 0x9c1   : > { %3361 = vmatpush3.msra.mxu0 %v1571_v55 }
 0xa31   : > { %v1483_v39 = vpop.xlane.xlu0 %1482 }
 0xa32   : > { %v1484_v40 = vsub.f32 %v1477_v36, %v1483_v39  ;;  %v3174_v36 = vld [vmem:[%s4202_s3 + $0x78] sm:$0xff]  ;;  %v3171_v39 = vld [vmem:[%s4202_s3 + $0x60] sm:$0xff] }
 0xa33   : > { %1850 = vmatprep.subr.mxu0 %v3174_v36 }
 0xa34   : > { %v1485_v41 = vmul.f32 1.442695, %v1484_v40  ;;  %v3170_v40 = vld [vmem:[%s4202_s3 + $0x58] sm:$0xff] }
 0xa35   : > { %v1496_v42 = vpop.permute.xlu0 %1495 }
 0xa36   : > { %3515 = vpow2.f32 %v1485_v41  ;;  %3354 = vmatpush3.msra.mxu1 %v1496_v42  ;;  %v3169_v41 = vld [vmem:[%s4202_s3 + $0x50] sm:$0xff]  ;;  %v3168_v42 = vld [vmem:[%s4202_s3 + $0x48] sm:$0xff] }
 0xa37   : > { %3365 = vmatprep.subr.mxu1 %v3607_v1 }
 0xa43   : > { %v3516_v43 = vpop.eup %3515 }
 0xa44   : > { %v1487_v44 = vsel %vm752_vm5, %v3516_v43, 0.0 }
 0xa45   : > { %1488 = vadd.xlane.f32.xlu1 %v1487_v44 }
 0xa63   : > { %v1398_v46 = vpop.f32.mrf.mxu1 }
 0xa64   : > { %v1402_v47 = vadd.f32 %v1398_v46, %v1156_v45 }
 0xa65   : > { %v3347_v48 = vpop.f32.mrf.mxu1 }
 0xa66   : > { %v3165_v48 = vld [vmem:[%s4210_s11] ss:$0 sm:$0xff] }
 0xace   : > { %v1489_v49 = vpop.xlane.xlu1 %1488 }
 0xacf   : > { %3517 = vrcp.f32 %v1489_v49 }
 0xadc   : > { %v3518_v50 = vpop.eup %3517 }
 0xadd   : > { %v1491_v51 = vmul.f32 %v3518_v50, %v1489_v49  ;;  %v3166_v49 = vld [vmem:[%s4211_s12] ss:$0 sm:$0xff] }
 0xadf   : > { %v1492_v52 = vsub.f32 2.0, %v1491_v51 }
 0xae1   : > { %v1493_v53 = vmul.f32 %v3518_v50, %v1492_v52  ;;  %v3175_v52 = vld [vmem:[%s4203_s4 + $0x2] sm:$0x3] }
 0xae3   : > { %v1494_v54 = vmul.f32 %v3516_v43, %v1493_v53  ;;  %v3167_v43 = vld [vmem:[%s4202_s3 + $0x40] sm:$0xff]  ;;  %v1816_v53 = vrot.slane %v3175_v52, %v589_v17 }
 0xae5   : > { %3356 = vmatmul.mubr.msk.f32.vlgmr.msra.gmra.mxu1 %vm752_vm5, %v1494_v54  ;;  %v1820_v54 = vrot.slane %v3175_v52, %v593_v22 }
 0xae6   : > { %3373 = vmatprep.mubr.msk.f32.mxu1 %vm3608_vm1, %v3607_v1  ;;  %3366 = vmatpush3.msra.mxu1 %v1689_v7 }
 0xae7   : > { %3367 = vmatprep.subr.mxu1 %v3607_v1 }
 0xae8   : > { %3368 = vmatpush3.msra.mxu1 %v1688_v8 }
 0xae9   : > { %3369 = vmatprep.subr.mxu1 %v3607_v1 }
 0xba5   : > { %v1567_v56 = vpop.f32.mrf.mxu1 }
 0xba6   : > { %3363 = vmatmul.mubr.msk.f32.vlgmr.msra.gmra.mxu0 %vm676_vm4, %v1567_v56 }
 0xba7   : > { %v3357_v57 = vpop.f32.mrf.mxu1  ;;  %1890 = vmatprep.mubr.f32.mxu0 %v3607_v1  ;;  %1851 = vmatpush1.msra.mxu0 %v3173_v37 }
 0xba8   : > { %1852 = vmatprep.subr.mxu0 %v3172_v38 }
 0xba9   : > { %1853 = vmatpush1.msra.mxu0 %v3171_v39 }
 0xbaa   : > { %1854 = vmatprep.subr.mxu0 %v3170_v40 }
 0xbab   : > { %1855 = vmatpush1.msra.mxu0 %v3169_v41 }
 0xbac   : > { %1856 = vmatprep.subr.mxu0 %v3168_v42 }
 0xbad   : > { %1857 = vmatpush1.msra.mxu0 %v3167_v43 }
 0xbae   : > { %3381 = vmatprep.subr.mxu0 %v3607_v1 }
 0xc66   : > { %v1642_v58 = vpop.f32.mrf.mxu0 }
 0xc67   : > { %v1646_v60 = vadd.f32 %v1642_v58, %v1402_v47 }
 0xc68   : > { %v3364_v61 = vpop.f32.mrf.mxu0 }
 0xc69   : > { %v1654_v62 = vadd.f32 %v3160_v59, %v1646_v60 }
 0xc6b   : > { %v1655_v63 = vadd.f32 %v1654_v62, %v3788_v13  ;;  %v1687_v13 = vld [vmem:[%s4208_s9 + $0x8] sm:$0xff] }
 0xc6c   : > { %3370 = vmatpush3.msra.mxu1 %v1687_v13 }
 0xc6d   : > { %v1658_v0 = vsel %vm597_vm3, %v1655_v63, 0.0  ;;  %3371 = vmatprep.subr.mxu1 %v3607_v1 }
 0xc6e   : > { %1659 = vadd.xlane.f32.xlu1 %v1658_v0  ;;  %3372 = vmatpush3.msra.mxu1 %v1686_v9 }
 0xc6f   : > { %3376 = vmatprep.subr.mxu1 %v3607_v1 }
 0xcf7   : > { %v1660_v2 = vpop.xlane.xlu1 %1659 }
 0xcf8   : > { %v1662_v3 = vmul.f32 0.03125, %v1660_v2 }
 0xcfa   : > { %v1663_v4 = vsub.f32 %v1655_v63, %v1662_v3 }
 0xcfc   : > { %v1664_v5 = vmul.f32 %v1663_v4, %v1663_v4 }
 0xcfe   : > { %v1665_v6 = vsel %vm597_vm3, %v1664_v5, 0.0 }
 0xcff   : > { %1666 = vadd.xlane.f32.xlu1 %v1665_v6 }
 0xd88   : > { %v1667_v10 = vpop.xlane.xlu1 %1666 }
 0xd89   : > { %v1668_v11 = vmul.f32 0.03125, %v1667_v10 }
 0xd8b   : > { %v1669_v12 = vadd.f32 1e-05, %v1668_v11 }
 0xd8d   : > { %3519 = vrsqrt.f32 %v1669_v12 }
 0xd9a   : > { %v3520_v14 = vpop.eup %3519 }
 0xd9b   : > { %v1671_v18 = vmul.f32 %v3520_v14, %v1663_v4 }
 0xd9d   : > { %v1678_v20 = vmul.f32 %v3161_v15, %v1671_v18 }
 0xd9f   : > { %v1685_v23 = vadd.f32 %v3162_v19, %v1678_v20 }
 0xda1   : > { %3374 = vmatmul.mubr.msk.f32.vlgmr.msra.gmra.mxu1 %vm597_vm3, %v1685_v23 }
 0xda2   : > { %3378 = vmatprep.mubr.msk.f32.mxu1 %vm3608_vm1, %v3607_v1 }
 0xe61   : > { %v1766_v25 = vpop.f32.mrf.mxu1 }
 0xe62   : > { %v1767_v26 = vadd.f32 %v3163_v24, %v1766_v25 }
 0xe63   : > { %v3375_v28 = vpop.f32.mrf.mxu1 }
 0xe64   : > { %v1770_v29 = vmax.f32 %v1767_v26, 0.0 }
 0xe66   : > { %v1771_v30 = vadd.f32 %v1770_v29, %v1685_v23 }
 0xe68   : > { %v1774_v31 = vsel %vm597_vm3, %v1771_v30, 0.0 }
 0xe69   : > { %1775 = vadd.xlane.f32.xlu0 %v1774_v31  ;;  %v3181_v31 = vld [vmem:[%s4204_s5 + $0x48] sm:$0xff] }
 0xef2   : > { %v1776_v32 = vpop.xlane.xlu0 %1775 }
 0xef3   : > { %v1777_v21 = vmul.f32 0.03125, %v1776_v32  ;;  %v3180_v32 = vld [vmem:[%s4204_s5 + $0x40] sm:$0xff] }
 0xef5   : > { %v1778_v33 = vsub.f32 %v1771_v30, %v1777_v21  ;;  %v3186_v21 = vld [vmem:[%s4204_s5 + $0x58] sm:$0xff] }
 0xef7   : > { %v1779_v34 = vmul.f32 %v1778_v33, %v1778_v33 }
 0xef9   : > { %v1780_v35 = vsel %vm597_vm3, %v1779_v34, 0.0 }
 0xefa   : > { %1781 = vadd.xlane.f32.xlu1 %v1780_v35 }
 0xf83   : > { %v1782_v44 = vpop.xlane.xlu1 %1781 }
 0xf84   : > { %v1783_v45 = vmul.f32 0.03125, %v1782_v44 }
 0xf86   : > { %v1784_v46 = vadd.f32 1e-05, %v1783_v45 }
 0xf88   : > { %3521 = vrsqrt.f32 %v1784_v46 }
 0xf95   : > { %v3522_v47 = vpop.eup %3521 }
 0xf96   : > { %v1786_v27 = vmul.f32 %v3522_v47, %v1778_v33  ;;  %v3185_v33 = vld [vmem:[%s4204_s5 + $0x50] sm:$0xff] }
 0xf98   : > { %v1793_v50 = vmul.f32 %v3165_v48, %v1786_v27 }
 0xf9a   : > { %v3990_v51 = vadd.f32 %v3166_v49, %v1793_v50 }
 0xf9c   : > { %3176 = vmatmul.mubr.msk.f32.vlgmr.msra.gmra.mxu0 %vm597_vm3, %v3990_v51 }
 0xf9d   : > { %3383 = vmatprep.mubr.msk.f32.mxu0 %vm3608_vm1, %v3607_v1 }
0x105c   : > { %v1892_v55 = vpop.f32.mrf.mxu0 }
0x105d   : > { %v4003_v56 = vadd.f32 %v1892_v55, %v1816_v53 }
0x105e   : > { %v1894_v57 = vpop.f32.mrf.mxu0 }
0x105f   : > { %v4005_v58 = vadd.f32 %v1894_v57, %v1820_v54  ;;  %1899 = vrot.lane.b32.xlu1 %v4003_v56, %s3609_s26  ;;  %v4014_v17 = vmul.f32 0.57434916, %v4003_v56  ;;  %s4242_s26 = smov 96   ;;  %v3193_v54 = vld [vmem:[%s4204_s5 + $0x68] sm:$0xff] }
0x1061   : > { %3382 = vmatpush3.msra.mxu0 %v4005_v58 }
0x1062   : > { %3391 = vmatprep.subr.mxu0 %v3607_v1 }
0x1063   : > { %2068 = vrot.lane.b32.xlu1 %v4003_v56, %s4240_s16  ;;  %s3545_s16 = scalar_lea.vmem %s3076_s24, 128 }
0x1064   : > { %p3546_p11 = scmp.ne.s32.totalorder %s3076_s24, %s3545_s16 }
0x1066   : > { %p3547_p12 = pnand %p3546_p11, %p3735_p5 }
0x1067   : > { %2066 = vrot.lane.b32.xlu1 %v4014_v17, %s4241_s17 }
0x1068   : > { %p3548_p13 = pneg %p3547_p12 }
0x10d1   : > { %v1900_v16 = vpop.permute.xlu1 %1899 }
0x10d2   : > { %3377 = vmatpush3.xpose.msk.msra.mxu1 %vm676_vm4, %v1900_v16 }
0x10d3   : > { %3386 = vmatprep.subr.mxu1 %v3607_v1 }
0x10d5   : > { %v2069_v22 = vpop.permute.xlu1 %2068  ;;  %3379 = vmatmul.mubr.msk.f32.vlgmr.msra.gmra.mxu1 %vm676_vm4, %v4014_v17 }
0x10d6   : > { %3387 = vmatpush3.xpose.msk.msra.mxu1 %vm676_vm4, %v2069_v22  ;;  %3388 = vmatprep.mubr.msk.f32.mxu1 %vm3608_vm1, %v3607_v1 }
0x10d7   : > { %3396 = vmatprep.subr.mxu1 %v3607_v1 }
0x10d9   : > { %v2067_v59 = vpop.permute.xlu1 %2066 }
0x10da   : > { %3389 = vmatmul.mubr.msk.f32.vlgmr.msra.gmra.mxu1 %vm676_vm4, %v2067_v59 }
0x10db   : > { %3400 = vmatprep.mubr.msk.f32.mxu1 %vm3608_vm1, %v3607_v1  ;;  %3397 = vmatpush3.msra.mxu1 %v3186_v21 }
0x10dc   : > { %3398 = vmatprep.subr.mxu1 %v3607_v1 }
0x10dd   : > { %3399 = vmatpush3.msra.mxu1 %v3185_v33 }
0x10de   : > { %3410 = vmatprep.subr.mxu1 %v3607_v1 }
0x1195   : > { %v1972_v60 = vpop.f32.mrf.mxu1 }
0x1196   : > { %v1976_v61 = vsel %vm752_vm5, %v1972_v60, -inf }
0x1197   : > { %1977 = vmax.xlane.f32.xlu1 %v1976_v61  ;;  %v3380_v62 = vpop.f32.mrf.mxu1  ;;  %v3192_v61 = vld [vmem:[%s4204_s5 + $0x60] sm:$0xff] }
0x119a   : > { %v2140_v63 = vpop.f32.mrf.mxu1 }
0x119b   : > { %v2144_v0 = vsel %vm752_vm5, %v2140_v63, -inf }
0x119c   : > { %2145 = vmax.xlane.f32.xlu0 %v2144_v0  ;;  %v3390_v2 = vpop.f32.mrf.mxu1 }
0x11a8   : > { %2383 = vrot.lane.b32.xlu1 %v4014_v17, %s4242_s26 }
0x1220   : > { %v1978_v3 = vpop.xlane.xlu1 %1977 }
0x1221   : > { %v1979_v4 = vsub.f32 %v1972_v60, %v1978_v3 }
0x1223   : > { %v1980_v5 = vmul.f32 1.442695, %v1979_v4 }
0x1224   : > { %v2384_v39 = vpop.permute.xlu1 %2383 }
0x1225   : > { %3523 = vpow2.f32 %v1980_v5  ;;  %v2146_v6 = vpop.xlane.xlu0 %2145 }
0x1226   : > { %v2147_v7 = vsub.f32 %v2140_v63, %v2146_v6 }
0x1228   : > { %v2148_v8 = vmul.f32 1.442695, %v2147_v7 }
0x122a   : > { %3525 = vpow2.f32 %v2148_v8 }
0x1232   : > { %v3524_v13 = vpop.eup %3523 }
0x1233   : > { %v1982_v9 = vsel %vm752_vm5, %v3524_v13, 0.0 }
0x1234   : > { %1983 = vadd.xlane.f32.xlu0 %v1982_v9 }
0x1237   : > { %v3526_v10 = vpop.eup %3525 }
0x1238   : > { %v2150_v11 = vsel %vm752_vm5, %v3526_v10, 0.0 }
0x1239   : > { %2151 = vadd.xlane.f32.xlu0 %v2150_v11 }
0x124f   : > { %2159 = vrot.lane.b32.xlu0 %v4005_v58, %s4241_s17  ;;  %s4244_s17 = smov 80  }
0x1253   : > { %2385 = vrot.lane.b32.xlu0 %v4003_v56, %s4243_s29  ;;  %s4245_s29 = smov 16  }
0x12bd   : > { %v1984_v12 = vpop.xlane.xlu0 %1983 }
0x12be   : > { %3527 = vrcp.f32 %v1984_v12 }
0x12c2   : > { %v2152_v14 = vpop.xlane.xlu0 %2151 }
0x12c3   : > { %3529 = vrcp.f32 %v2152_v14 }
0x12c6   : > { %v2160_v28 = vpop.permute.xlu0 %2159 }
0x12ca   : > { %v2386_v37 = vpop.permute.xlu0 %2385 }
0x12cb   : > { %v3528_v15 = vpop.eup %3527 }
0x12cc   : > { %v1986_v18 = vmul.f32 %v3528_v15, %v1984_v12  ;;  %v3199_v12 = vld [vmem:[%s4204_s5 + $0x78] sm:$0xff] }
0x12ce   : > { %v1987_v19 = vsub.f32 2.0, %v1986_v18 }
0x12d0   : > { %v3530_v20 = vpop.eup %3529  ;;  %v1988_v23 = vmul.f32 %v3528_v15, %v1987_v19 }
0x12d1   : > { %v2154_v24 = vmul.f32 %v3530_v20, %v2152_v14 }
0x12d2   : > { %v1989_v25 = vmul.f32 %v3524_v13, %v1988_v23  ;;  %v3198_v23 = vld [vmem:[%s4204_s5 + $0x70] sm:$0xff] }
0x12d3   : > { %v2155_v26 = vsub.f32 2.0, %v2154_v24 }
0x12d4   : > { %3384 = vmatmul.mubr.msk.f32.vlgmr.msra.gmra.mxu0 %vm752_vm5, %v1989_v25 }
0x12d5   : > { %v2156_v29 = vmul.f32 %v3530_v20, %v2155_v26  ;;  %3392 = vmatpush3.msra.mxu0 %v2160_v28  ;;  %3393 = vmatprep.mubr.msk.f32.mxu0 %vm3608_vm1, %v3607_v1  ;;  %v3202_v28 = vld [vmem:[%s4205_s6 + $0x1] ss:$0 sm:$0xff] }
0x12d6   : > { %3403 = vmatprep.subr.mxu0 %v3607_v1 }
0x12d7   : > { %v2157_v30 = vmul.f32 %v3526_v10, %v2156_v29 }
0x12d9   : > { %3394 = vmatmul.mubr.msk.f32.vlgmr.msra.gmra.mxu0 %vm752_vm5, %v2157_v30 }
0x12da   : > { %3404 = vmatpush3.msra.mxu0 %v3181_v31  ;;  %3407 = vmatprep.mubr.msk.f32.mxu0 %vm3608_vm1, %v3607_v1 }
0x12db   : > { %3405 = vmatprep.subr.mxu0 %v3607_v1 }
0x12dc   : > { %3406 = vmatpush3.msra.mxu0 %v3180_v32 }
0x12dd   : > { %3415 = vmatprep.subr.mxu0 %v3607_v1 }
0x1394   : > { %v2059_v34 = vpop.f32.mrf.mxu0 }
0x1395   : > { %3408 = vmatmul.mubr.msk.f32.vlgmr.msra.gmra.mxu0 %vm676_vm4, %v2059_v34 }
0x1396   : > { %v3385_v35 = vpop.f32.mrf.mxu0  ;;  %3417 = vmatprep.mubr.msk.f32.mxu0 %vm3608_vm1, %v3607_v1 }
0x1399   : > { %v2231_v36 = vpop.f32.mrf.mxu0 }
0x139a   : > { %3401 = vmatmul.mubr.msk.f32.vlgmr.msra.gmra.mxu1 %vm676_vm4, %v2231_v36 }
0x139b   : > { %3411 = vmatpush3.xpose.msk.msra.mxu1 %vm676_vm4, %v2386_v37  ;;  %v3395_v38 = vpop.f32.mrf.mxu0  ;;  %3412 = vmatprep.mubr.msk.f32.mxu1 %vm3608_vm1, %v3607_v1 }
0x139c   : > { %3420 = vmatprep.subr.mxu1 %v3607_v1  ;;  %v3210_v38 = vld [vmem:[%s4208_s9 + $0x38] sm:$0xff] }
0x139e   : > { %3413 = vmatmul.mubr.msk.f32.vlgmr.msra.gmra.mxu1 %vm676_vm4, %v2384_v39  ;;  %v3209_v39 = vld [vmem:[%s4208_s9 + $0x30] sm:$0xff] }
0x139f   : > { %3424 = vmatprep.mubr.msk.f32.mxu1 %vm3608_vm1, %v3607_v1  ;;  %3421 = vmatpush3.msra.mxu1 %v3193_v54 }
0x13a0   : > { %3422 = vmatprep.subr.mxu1 %v3607_v1 }
0x13a1   : > { %3423 = vmatpush3.msra.mxu1 %v3192_v61 }
0x13a2   : > { %3432 = vmatprep.subr.mxu1 %v3607_v1 }
0x1455   : > { %v2379_v40 = vpop.f32.mrf.mxu0 }
0x1457   : > { %v3409_v41 = vpop.f32.mrf.mxu0 }
0x145a   : > { %v2306_v42 = vpop.f32.mrf.mxu1 }
0x145b   : > { %v2380_v43 = vadd.f32 %v2379_v40, %v2306_v42  ;;  %v3207_v40 = vld [vmem:[%s4208_s9 + $0x20] sm:$0xff] }
0x145c   : > { %v3402_v44 = vpop.f32.mrf.mxu1 }
0x145e   : > { %v2457_v45 = vpop.f32.mrf.mxu1 }
0x145f   : > { %v2461_v46 = vsel %vm752_vm5, %v2457_v45, -inf }
0x1460   : > { %2462 = vmax.xlane.f32.xlu0 %v2461_v46  ;;  %v3414_v47 = vpop.f32.mrf.mxu1 }
0x1461   : > { %v3206_v47 = vld [vmem:[%s4207_s8 + $0x1] ss:$0 sm:$0xff] }
0x1476   : > { %2475 = vrot.lane.b32.xlu0 %v4005_v58, %s4242_s26  ;;  %s3221_s26 = sshll.u32 %s3718_s22, 7 }
0x1477   : > { %s3073_s0 = scalar_lea.hbm %s4214_s15, %s3221_s26 }
0x147a   : > { %2627 = vrot.lane.b32.xlu0 %v4014_v17, %s4244_s17 }
0x14e9   : > { %v2463_v48 = vpop.xlane.xlu0 %2462 }
0x14ea   : > { %v2464_v27 = vsub.f32 %v2457_v45, %v2463_v48  ;;  %v3205_v45 = vld [vmem:[%s4206_s7 + $0x1] ss:$0 sm:$0xff] }
0x14ec   : > { %v2465_v49 = vmul.f32 1.442695, %v2464_v27 }
0x14ed   : > { %v2476_v50 = vpop.permute.xlu0 %2475 }
0x14ee   : > { %3531 = vpow2.f32 %v2465_v49  ;;  %3416 = vmatpush3.msra.mxu0 %v2476_v50 }
0x14ef   : > { %3427 = vmatprep.subr.mxu0 %v3607_v1 }
0x14fb   : > { %v3532_v52 = vpop.eup %3531 }
0x14fc   : > { %v2467_v53 = vsel %vm752_vm5, %v3532_v52, 0.0 }
0x14fd   : > { %2468 = vadd.xlane.f32.xlu1 %v2467_v53 }
0x150e   : > { %2629 = vrot.lane.b32.xlu1 %v4003_v56, %s4245_s29  ;;  %v2628_v56 = vpop.permute.xlu0 %2627 }
0x1586   : > { %v2469_v55 = vpop.xlane.xlu1 %2468 }
0x1587   : > { %3533 = vrcp.f32 %v2469_v55 }
0x158a   : > { %v2630_v60 = vpop.permute.xlu1 %2629 }
0x1594   : > { %v3534_v57 = vpop.eup %3533 }
0x1595   : > { %v2471_v17 = vmul.f32 %v3534_v57, %v2469_v55 }
0x1597   : > { %v2472_v16 = vsub.f32 2.0, %v2471_v17 }
0x1599   : > { %v2473_v22 = vmul.f32 %v3534_v57, %v2472_v16 }
0x159b   : > { %v2474_v59 = vmul.f32 %v3532_v52, %v2473_v22 }
0x159d   : > { %3418 = vmatmul.mubr.msk.f32.vlgmr.msra.gmra.mxu0 %vm752_vm5, %v2474_v59 }
0x159e   : > { %3428 = vmatpush3.xpose.msk.msra.mxu0 %vm676_vm4, %v2630_v60  ;;  %3429 = vmatprep.mubr.msk.f32.mxu0 %vm3608_vm1, %v3607_v1 }
0x159f   : > { %3437 = vmatprep.subr.mxu0 %v3607_v1 }
0x15a1   : > { %3430 = vmatmul.mubr.msk.f32.vlgmr.msra.gmra.mxu0 %vm676_vm4, %v2628_v56 }
0x15a2   : > { %3441 = vmatprep.mubr.msk.f32.mxu0 %vm3608_vm1, %v3607_v1  ;;  %3438 = vmatpush3.msra.mxu0 %v3199_v12 }
0x15a3   : > { %3439 = vmatprep.subr.mxu0 %v3607_v1 }
0x15a4   : > { %3440 = vmatpush3.msra.mxu0 %v3198_v23 }
0x165d   : > { %v2547_v62 = vpop.f32.mrf.mxu0 }
0x165e   : > { %3425 = vmatmul.mubr.msk.f32.vlgmr.msra.gmra.mxu1 %vm676_vm4, %v2547_v62 }
0x165f   : > { %v3419_v63 = vpop.f32.mrf.mxu0  ;;  %3434 = vmatprep.mubr.msk.f32.mxu1 %vm3608_vm1, %v3607_v1 }
0x1660   : > { %v3216_v63 = vld [vmem:[%s4210_s11 + $0x1] ss:$0 sm:$0xff] }
0x1661   : > { %v2701_v0 = vpop.f32.mrf.mxu0 }
0x1662   : > { %v2705_v2 = vsel %vm752_vm5, %v2701_v0, -inf }
0x1663   : > { %2706 = vmax.xlane.f32.xlu0 %v2705_v2  ;;  %v3431_v3 = vpop.f32.mrf.mxu0  ;;  %v3217_v2 = vld [vmem:[%s4211_s12 + $0x1] ss:$0 sm:$0xff] }
0x1679   : > { %2719 = vrot.lane.b32.xlu0 %v4005_v58, %s4244_s17  ;;  %s3616_s17 = smov [#allocation2]  }
0x167a   : > { %s3549_s29 = sshll.u32 %s3616_s17, 4  ;;  %s3550_s29 = int_to_ptr.vmem [resolvable:$false] %s3549_s29 }
0x167b   : > { %s3551_s22 = scalar_lea.vmem %s3550_s29, 256  ;;  %p3552_p0 = scmp.lt.s32.totalorder %s3076_s24, %s3550_s29 }
0x167c   : > { %p3553_p1 = scmp.lt.s32.totalorder %s3551_s22, %s3545_s16 }
0x167e   : > { %p3554_p2 = por %p3553_p1, %p3552_p0 }
0x1680   : > { %p3555_p3 = pnand %p3554_p2, %p3548_p13 }
0x16ec   : > { %v2707_v4 = vpop.xlane.xlu0 %2706 }
0x16ed   : > { %v2708_v5 = vsub.f32 %v2701_v0, %v2707_v4 }
0x16ef   : > { %v2709_v6 = vmul.f32 1.442695, %v2708_v5 }
0x16f0   : > { %v2720_v7 = vpop.permute.xlu0 %2719 }
0x16f1   : > { %3535 = vpow2.f32 %v2709_v6  ;;  %3433 = vmatpush3.msra.mxu1 %v2720_v7 }
0x16f2   : > { %3444 = vmatprep.subr.mxu1 %v3607_v1 }
0x16fe   : > { %v3536_v8 = vpop.eup %3535 }
0x16ff   : > { %v2711_v13 = vsel %vm752_vm5, %v3536_v8, 0.0 }
0x1700   : > { %2712 = vadd.xlane.f32.xlu1 %v2711_v13 }
0x171e   : > { %v2622_v9 = vpop.f32.mrf.mxu1 }
0x171f   : > { %v2626_v10 = vadd.f32 %v2622_v9, %v2380_v43 }
0x1720   : > { %v3426_v11 = vpop.f32.mrf.mxu1 }
0x1789   : > { %v2713_v58 = vpop.xlane.xlu1 %2712 }
0x178a   : > { %3537 = vrcp.f32 %v2713_v58 }
0x1797   : > { %v3538_v14 = vpop.eup %3537 }
0x1798   : > { %v2715_v15 = vmul.f32 %v3538_v14, %v2713_v58 }
0x179a   : > { %v2716_v18 = vsub.f32 2.0, %v2715_v15 }
0x179c   : > { %v2717_v19 = vmul.f32 %v3538_v14, %v2716_v18  ;;  %v3218_v14 = vld [vmem:[%s4212_s13] ss:$0 sm:$0xff] }
0x179d   : > { %v3219_v18 = vld [vmem:[%s4213_s14] ss:$0 sm:$0xff] }
0x179e   : > { %v2718_v20 = vmul.f32 %v3536_v8, %v2717_v19 }
0x17a0   : > { %3435 = vmatmul.mubr.msk.f32.vlgmr.msra.gmra.mxu1 %vm752_vm5, %v2718_v20 }
0x17a1   : > { %3452 = vmatprep.mubr.msk.f32.mxu1 %vm3608_vm1, %v3607_v1  ;;  %3445 = vmatpush3.msra.mxu1 %v3210_v38 }
0x17a2   : > { %3446 = vmatprep.subr.mxu1 %v3607_v1 }
0x17a3   : > { %3447 = vmatpush3.msra.mxu1 %v3209_v39 }
0x17a4   : > { %3448 = vmatprep.subr.mxu1 %v3607_v1 }
0x1860   : > { %v2791_v24 = vpop.f32.mrf.mxu1 }
0x1861   : > { %3442 = vmatmul.mubr.msk.f32.vlgmr.msra.gmra.mxu0 %vm676_vm4, %v2791_v24 }
0x1862   : > { %v3436_v25 = vpop.f32.mrf.mxu1 }
0x1921   : > { %v2866_v26 = vpop.f32.mrf.mxu0 }
0x1922   : > { %v2870_v29 = vadd.f32 %v2866_v26, %v2626_v10 }
0x1923   : > { %v3443_v30 = vpop.f32.mrf.mxu0 }
0x1924   : > { %v2879_v31 = vadd.f32 %v3202_v28, %v2870_v29 }
0x1926   : > { %v2880_v32 = vadd.f32 %v2879_v31, %v3990_v51  ;;  %v3208_v51 = vld [vmem:[%s4208_s9 + $0x28] sm:$0xff] }
0x1927   : > { %3449 = vmatpush3.msra.mxu1 %v3208_v51 }
0x1928   : > { %v2885_v21 = vsel %vm597_vm3, %v2880_v32, 0.0  ;;  %3450 = vmatprep.subr.mxu1 %v3607_v1  ;;  %v3212_v1 = vld [vmem:[%s4209_s10 + $0x1] ss:$0 sm:$0xff] }
0x1929   : > { %2886 = vadd.xlane.f32.xlu1 %v2885_v21  ;;  %3451 = vmatpush3.msra.mxu1 %v3207_v40 }
0x19b2   : > { %v2887_v33 = vpop.xlane.xlu1 %2886 }
0x19b3   : > { %v2888_v34 = vmul.f32 0.03125, %v2887_v33 }
0x19b5   : > { %v2889_v35 = vsub.f32 %v2880_v32, %v2888_v34 }
0x19b7   : > { %v2890_v36 = vmul.f32 %v2889_v35, %v2889_v35 }
0x19b9   : > { %v2891_v37 = vsel %vm597_vm3, %v2890_v36, 0.0 }
0x19ba   : > { %2892 = vadd.xlane.f32.xlu1 %v2891_v37 }
0x1a43   : > { %v2893_v41 = vpop.xlane.xlu1 %2892 }
0x1a44   : > { %v2894_v42 = vmul.f32 0.03125, %v2893_v41 }
0x1a46   : > { %v2895_v43 = vadd.f32 1e-05, %v2894_v42 }
0x1a48   : > { %3539 = vrsqrt.f32 %v2895_v43 }
0x1a55   : > { %v3540_v44 = vpop.eup %3539 }
0x1a56   : > { %v2897_v46 = vmul.f32 %v3540_v44, %v2889_v35 }
0x1a58   : > { %v2904_v48 = vmul.f32 %v3205_v45, %v2897_v46 }
0x1a5a   : > { %v2911_v27 = vadd.f32 %v3206_v47, %v2904_v48 }
0x1a5c   : > { %3453 = vmatmul.mubr.msk.f32.vlgmr.msra.gmra.mxu1 %vm597_vm3, %v2911_v27 }
0x1b1c   : > { %v2994_v49 = vpop.f32.mrf.mxu1 }
0x1b1d   : > { %v2995_v50 = vadd.f32 %v3212_v1, %v2994_v49 }
0x1b1e   : > { %v3454_v52 = vpop.f32.mrf.mxu1 }
0x1b1f   : > { %v2998_v53 = vmax.f32 %v2995_v50, 0.0 }
0x1b21   : > { %v2999_v54 = vadd.f32 %v2998_v53, %v2911_v27 }
0x1b23   : > { %v3004_v55 = vsel %vm597_vm3, %v2999_v54, 0.0 }
0x1b24   : > { %3005 = vadd.xlane.f32.xlu0 %v3004_v55 }
0x1bad   : > { %v3006_v57 = vpop.xlane.xlu0 %3005 }
0x1bae   : > { %v3007_v17 = vmul.f32 0.03125, %v3006_v57 }
0x1bb0   : > { %v3008_v16 = vsub.f32 %v2999_v54, %v3007_v17 }
0x1bb2   : > { %v3009_v22 = vmul.f32 %v3008_v16, %v3008_v16 }
0x1bb4   : > { %v3010_v59 = vsel %vm597_vm3, %v3009_v22, 0.0 }
0x1bb5   : > { %3011 = vadd.xlane.f32.xlu1 %v3010_v59 }
0x1c3e   : > { %v3012_v60 = vpop.xlane.xlu1 %3011 }
0x1c3f   : > { %v3013_v56 = vmul.f32 0.03125, %v3012_v60 }
0x1c41   : > { %v3014_v61 = vadd.f32 1e-05, %v3013_v56 }
0x1c43   : > { %3541 = vrsqrt.f32 %v3014_v61 }
0x1c50   : > { %v3542_v62 = vpop.eup %3541 }
0x1c51   : > { %v3016_v0 = vmul.f32 %v3542_v62, %v3008_v16 }
0x1c53   : > { %v3023_v3 = vmul.f32 %v3216_v63, %v3016_v0 }
0x1c55   : > { %v3030_v4 = vadd.f32 %v3217_v2, %v3023_v3 }
0x1c57   : > { %v3033_v5 = vsel %vm597_vm3, %v3030_v4, 0.0 }
0x1c58   : > { %3034 = vadd.xlane.f32.xlu1 %v3033_v5 }
0x1ce1   : > { %v3035_v6 = vpop.xlane.xlu1 %3034 }
0x1ce2   : > { %v3036_v7 = vmul.f32 0.03125, %v3035_v6 }
0x1ce4   : > { %v3037_v8 = vsub.f32 %v3030_v4, %v3036_v7 }
0x1ce6   : > { %v3038_v13 = vmul.f32 %v3037_v8, %v3037_v8 }
0x1ce8   : > { %v3039_v9 = vsel %vm597_vm3, %v3038_v13, 0.0 }
0x1ce9   : > { %3040 = vadd.xlane.f32.xlu1 %v3039_v9 }
0x1d72   : > { %v3041_v10 = vpop.xlane.xlu1 %3040 }
0x1d73   : > { %v3042_v11 = vmul.f32 0.03125, %v3041_v10 }
0x1d75   : > { %v3043_v12 = vadd.f32 1e-05, %v3042_v11 }
0x1d77   : > { %3543 = vrsqrt.f32 %v3043_v12 }
0x1d84   : > { %v3544_v58 = vpop.eup %3543 }
0x1d85   : > { %v3045_v15 = vmul.f32 %v3544_v58, %v3037_v8 }
0x1d87   : > { %v3052_v19 = vmul.f32 %v3218_v14, %v3045_v15 }
0x1d89   : > { %v3059_v20 = vadd.f32 %v3219_v18, %v3052_v19 }
0x1d8b   : > { %3060 = vst.msk [vmem:[%s485_s20] sm:$0xff] %vm597_vm3, %v3059_v20 }
0x1d8c   : > { %3558 = shalt.err (!%p3555_p3)
}
0x1d8d   : > { %s3559_s25 = scalar_lea.hbm %s3073_s0, 128  ;;  %s3563_s26 = scalar_lea.hbm %s4214_s15, 256 }
0x1d8e   : > { %p3560_p4 = scmp.ne.s32.totalorder %s3073_s0, %s3559_s25  ;;  %p3564_p9 = scmp.lt.s32.totalorder %s3073_s0, %s4214_s15 }
0x1d8f   : > { %p3565_p10 = scmp.lt.s32.totalorder %s3563_s26, %s3559_s25 }
0x1d90   : > { %p3561_p7 = pnand %p3560_p4, %p3735_p5 }
0x1d91   : > { %p3566_p11 = por %p3565_p10, %p3564_p9 }
0x1d92   : > { %p3562_p8 = pneg %p3561_p7 }
0x1d94   : > { %p3567_p12 = pnand %p3566_p11, %p3562_p8 }
0x1d96   : > { %3570 = shalt.err (!%p3567_p12)
}
0x1d97   : > { %3455 = dma.vmem_to_hbm [thread:$0]  (%p3735_p5), %s3076_s24, 128, %s3073_s0, %s3062_s2  }
0x1d98 PF: > { %p3461_p13 = scmp.ge.s32.totalorder %s3605_s21, 2  ;;  %s3087_s16 = sand.u32 1, %s3593_s18  }
0x1d99   : > { %s3088_s17 = scalar_lea.sflag [#allocation3], %s3087_s16 }
0x1d9a   : > { %p3458_p0 = pnand %p3461_p13, %p3739_p6 }
0x1d9c   : > { %p3459_p1 = pneg %p3458_p0 }
0x1d9e   : > { %3588 = dma.done.wait (%p3459_p1), %s3088_s17, 128  }
0x1d9f   : > { %3590 = vsyncadd (%p3459_p1), %s3088_s17, 4294967168  ;;  %s4247_s21 = sld [smem:[#allocation6_spill]]  ;;  %s4250_s18 = smov %s3597_s19 }
0x1da0   : > { %s4248_s29 = sld [smem:[#allocation5_spill]] }
0x1da1   : > { %s4249_s20 = sld [smem:[#allocation7_spill]] }
0x1da5   : > { %p25_p2 = scmp.ge.s32.totalorder %s4247_s21, 4  }
0x1da6   : > { %s4251_s19 = smov %s4248_s29 }
0x1da7   :  { %27 = sbr.rel (!%p25_p2) target bundleno = 7 (0x7), region = 125 }
0x1dac   :  { %3093 = vsyncpa [#allocation3], 1 }
0x1dad   :  { %3095 = vsyncpa [#allocation3 + $0x1], 1 }

</bundles_post_ra>
